<compile_context>
chip_gen: v7x
topology: tpu7x:2x2x1
jax: 0.10.0
libtpu: 0.0.40
codegen_flags: <defaults>
</compile_context>

<pallas_src>
import math
from functools import partial

import jax
import jax.numpy as jnp
from jax.experimental import pallas as pl
from jax.experimental.pallas import tpu as pltpu


_VMEM = pl.BlockSpec(memory_space=pltpu.MemorySpace.VMEM)
_LN_EPS = 1e-5
_BF16 = jnp.bfloat16
_COMPILER_PARAMS = pltpu.CompilerParams(vmem_limit_bytes=32 * 1024 * 1024)


# ----------------------------- in-kernel helpers -----------------------------

def _layernorm(x, g, b):
    mu = jnp.mean(x, axis=-1, keepdims=True)
    var = jnp.mean((x - mu) ** 2, axis=-1, keepdims=True)
    return (x - mu) * jax.lax.rsqrt(var + _LN_EPS) * g + b


def _mha(x_q, x_k, x_v, in_w, in_b, out_w, out_b, N, Lq, Lk, H, D):
    """Multi-head attention on batch-major 2D activations (all resident in VMEM).

    x_q: (N*Lq, E) query-side input (pos already added, row = n*Lq + l)
    x_k: (N*Lk, E) key-side input, x_v: (N*Lk, E) value-side input
    in_w: (E, 3E) bf16 = [Wq | Wk | Wv], 1/sqrt(D) pre-folded into Wq
    in_b: (1, 3E) f32, out_w: (E, E) bf16, out_b: (1, E) f32
    """
    E = H * D
    xq_b = x_q.astype(_BF16)
    if x_k is x_q:
        # q and k share their input -> one wider (E, 2E) MXU matmul.
        qk = jnp.dot(xq_b, in_w[:, :2 * E],
                     preferred_element_type=jnp.float32) + in_b[:, :2 * E]
        q, k = qk[:, :E], qk[:, E:]
    else:
        q = jnp.dot(xq_b, in_w[:, :E],
                    preferred_element_type=jnp.float32) + in_b[:, :E]
        k = jnp.dot(x_k.astype(_BF16), in_w[:, E:2 * E],
                    preferred_element_type=jnp.float32) + in_b[:, E:2 * E]
    v = jnp.dot(x_v.astype(_BF16), in_w[:, 2 * E:],
                preferred_element_type=jnp.float32) + in_b[:, 2 * E:]

    # Per-head loop is a short static loop (H small); the batch dimension N is handled
    # inside each einsum as a batched contraction, not by Python unrolling.
    head_outs = []
    for h in range(H):
        sl = slice(h * D, (h + 1) * D)
        qh = q[:, sl].astype(_BF16).reshape(N, Lq, D)
        kh = k[:, sl].astype(_BF16).reshape(N, Lk, D)
        vh = v[:, sl].astype(_BF16).reshape(N, Lk, D)
        s = jnp.einsum('nqd,nkd->nqk', qh, kh,
                       preferred_element_type=jnp.float32)          # (N, Lq, Lk)
        s = s - jnp.max(s, axis=-1, keepdims=True)
        p = jnp.exp(s)
        p = p / jnp.sum(p, axis=-1, keepdims=True)                   # exact softmax
        oh = jnp.einsum('nqk,nkd->nqd', p.astype(_BF16), vh,
                        preferred_element_type=jnp.float32)          # (N, Lq, D)
        head_outs.append(oh.reshape(N * Lq, D))

    # Lane-dim concat of head outputs, then ONE full-depth (K=E) output projection.
    o = jnp.concatenate(head_outs, axis=-1)                           # (N*Lq, E)
    return jnp.dot(o.astype(_BF16), out_w,
                   preferred_element_type=jnp.float32) + out_b


# ----------------------------- fused per-layer kernel -----------------------------

def decoder_layer_kernel(x_ref, qpos_ref, memk_ref, memv_ref,
                         sa_w_ref, sa_b_ref, sa_ow_ref, sa_ob_ref,
                         ca_w_ref, ca_b_ref, ca_ow_ref, ca_ob_ref,
                         w1_ref, b1_ref, w2_ref, b2_ref,
                         ln1g_ref, ln1b_ref, ln2g_ref, ln2b_ref,
                         ln3g_ref, ln3b_ref,
                         out_ref, *, L, S, N, H, D, pre_norm):
    x = x_ref[...].astype(jnp.float32)
    qpos = qpos_ref[...].astype(jnp.float32)
    memk = memk_ref[...]      # bf16, memory + memory_pos (pre-added once in the wrapper)
    memv = memv_ref[...]      # bf16, memory

    ln1g, ln1b = ln1g_ref[...], ln1b_ref[...]
    ln2g, ln2b = ln2g_ref[...], ln2b_ref[...]
    ln3g, ln3b = ln3g_ref[...], ln3b_ref[...]

    def ffn(inp):
        h = jnp.dot(inp.astype(_BF16), w1_ref[...],
                    preferred_element_type=jnp.float32) + b1_ref[...]
        h = jnp.maximum(h, 0.0)
        return jnp.dot(h.astype(_BF16), w2_ref[...],
                       preferred_element_type=jnp.float32) + b2_ref[...]

    if pre_norm:
        # DETR-style forward_pre: residual stream bypasses the LayerNorms.
        x2 = _layernorm(x, ln1g, ln1b)
        qk_in = x2 + qpos
        x = x + _mha(qk_in, qk_in, x2,
                     sa_w_ref[...], sa_b_ref[...], sa_ow_ref[...], sa_ob_ref[...],
                     N, L, L, H, D)
        x2 = _layernorm(x, ln2g, ln2b)
        x = x + _mha(x2 + qpos, memk, memv,
                     ca_w_ref[...], ca_b_ref[...], ca_ow_ref[...], ca_ob_ref[...],
                     N, L, S, H, D)
        x2 = _layernorm(x, ln3g, ln3b)
        x = x + ffn(x2)
    else:
        # DETR-style forward_post: LayerNorm after each residual add.
        qk_in = x + qpos
        x = x + _mha(qk_in, qk_in, x,
                     sa_w_ref[...], sa_b_ref[...], sa_ow_ref[...], sa_ob_ref[...],
                     N, L, L, H, D)
        x = _layernorm(x, ln1g, ln1b)
        x = x + _mha(x + qpos, memk, memv,
                     ca_w_ref[...], ca_b_ref[...], ca_ow_ref[...], ca_ob_ref[...],
                     N, L, S, H, D)
        x = _layernorm(x, ln2g, ln2b)
        x = x + ffn(x)
        x = _layernorm(x, ln3g, ln3b)

    out_ref[...] = x.astype(out_ref.dtype)


def decoder_layer(x2d, qpos2d, memk2d, memv2d, p, *, L, S, N, H, D, pre_norm):
    kernel = partial(decoder_layer_kernel, L=L, S=S, N=N, H=H, D=D, pre_norm=pre_norm)
    args = (x2d, qpos2d, memk2d, memv2d,
            p["sa_w"], p["sa_b"], p["sa_ow"], p["sa_ob"],
            p["ca_w"], p["ca_b"], p["ca_ow"], p["ca_ob"],
            p["w1"], p["b1"], p["w2"], p["b2"],
            p["ln1_g"], p["ln1_b"], p["ln2_g"], p["ln2_b"], p["ln3_g"], p["ln3_b"])
    return pl.pallas_call(
        kernel,
        out_shape=jax.ShapeDtypeStruct(x2d.shape, x2d.dtype),
        in_specs=[_VMEM] * len(args),
        out_specs=_VMEM,
        compiler_params=_COMPILER_PARAMS,
    )(*args)


# ----------------------------- final-norm kernel -----------------------------

def layernorm_kernel(x_ref, g_ref, b_ref, o_ref):
    o_ref[...] = _layernorm(x_ref[...].astype(jnp.float32),
                            g_ref[...], b_ref[...]).astype(o_ref.dtype)


def layernorm_op(x2d, g, b):
    return pl.pallas_call(
        layernorm_kernel,
        out_shape=jax.ShapeDtypeStruct(x2d.shape, x2d.dtype),
        in_specs=[_VMEM, _VMEM, _VMEM],
        out_specs=_VMEM,
        compiler_params=_COMPILER_PARAMS,
    )(x2d, g, b)


# ----------------------------- parameters -----------------------------

def init_raw_layer_params(key, embed_dim, num_heads, ffn_hidden_dim):
    """Parameters in PyTorch-native layout (weights are (out, in))."""
    E, F = embed_dim, ffn_hidden_dim
    ks = jax.random.split(key, 6)
    s = 0.02

    def mha(k):
        k1, k2, k3, k4 = jax.random.split(k, 4)
        return {
            "in_proj_weight": s * jax.random.normal(k1, (3 * E, E), jnp.float32),
            "in_proj_bias": s * jax.random.normal(k2, (3 * E,), jnp.float32),
            "out_proj_weight": s * jax.random.normal(k3, (E, E), jnp.float32),
            "out_proj_bias": s * jax.random.normal(k4, (E,), jnp.float32),
        }

    return {
        "self_attn": mha(ks[0]),
        "cross_attn": mha(ks[1]),
        "linear1_weight": s * jax.random.normal(ks[2], (F, E), jnp.float32),
        "linear1_bias": s * jax.random.normal(ks[3], (F,), jnp.float32),
        "linear2_weight": s * jax.random.normal(ks[4], (E, F), jnp.float32),
        "linear2_bias": s * jax.random.normal(ks[5], (E,), jnp.float32),
        "ln1": {"g": jnp.ones((E,), jnp.float32), "b": jnp.zeros((E,), jnp.float32)},
        "ln2": {"g": jnp.ones((E,), jnp.float32), "b": jnp.zeros((E,), jnp.float32)},
        "ln3": {"g": jnp.ones((E,), jnp.float32), "b": jnp.zeros((E,), jnp.float32)},
    }


def prepare_layer_params(raw, embed_dim, num_heads):
    """Kernel-ready layout: weights transposed to (in, out), cast to bf16 (native MXU
    dtype on v5e/v6e/v7x); 1/sqrt(D) softmax scale folded into Wq/bq; biases / LN
    params kept f32 (added after f32 accumulation)."""
    E = embed_dim
    D = E // num_heads
    scale = 1.0 / math.sqrt(D)

    def mha(p):
        w = jnp.transpose(p["in_proj_weight"])          # (E, 3E) so kernel does x @ w
        b = p["in_proj_bias"].reshape(1, 3 * E)
        w = w.at[:, :E].multiply(scale)                 # fold softmax scale into Wq
        b = b.at[:, :E].multiply(scale)                 # ... and into bq
        return (w.astype(_BF16), b.astype(jnp.float32),
                jnp.transpose(p["out_proj_weight"]).astype(_BF16),   # (E, E)
                p["out_proj_bias"].reshape(1, E).astype(jnp.float32))

    sa_w, sa_b, sa_ow, sa_ob = mha(raw["self_attn"])
    ca_w, ca_b, ca_ow, ca_ob = mha(raw["cross_attn"])
    return {
        "sa_w": sa_w, "sa_b": sa_b, "sa_ow": sa_ow, "sa_ob": sa_ob,
        "ca_w": ca_w, "ca_b": ca_b, "ca_ow": ca_ow, "ca_ob": ca_ob,
        "w1": jnp.transpose(raw["linear1_weight"]).astype(_BF16),     # (E, F)
        "b1": raw["linear1_bias"].reshape(1, -1).astype(jnp.float32),
        "w2": jnp.transpose(raw["linear2_weight"]).astype(_BF16),     # (F, E)
        "b2": raw["linear2_bias"].reshape(1, -1).astype(jnp.float32),
        "ln1_g": raw["ln1"]["g"].reshape(1, E), "ln1_b": raw["ln1"]["b"].reshape(1, E),
        "ln2_g": raw["ln2"]["g"].reshape(1, E), "ln2_b": raw["ln2"]["b"].reshape(1, E),
        "ln3_g": raw["ln3"]["g"].reshape(1, E), "ln3_b": raw["ln3"]["b"].reshape(1, E),
    }


# ----------------------------- TransformerDecoder forward -----------------------------

@partial(jax.jit, static_argnames=("num_heads", "is_before_norm"))
def transformer_decoder(layer_params, final_norm, query, memory,
                        query_pos=None, memory_pos=None,
                        num_heads=4, is_before_norm=False):
    """PyTorch TransformerDecoder.forward (all masks = None, dropout = eval)."""
    L, N, E = query.shape
    S = memory.shape[0]
    D = E // num_heads

    qpos = jnp.zeros_like(query) if query_pos is None else query_pos

    # One transpose into batch-major 2D layout for the whole stack (and one back),
    # instead of per-layer HBM transposes around the attention core.
    def to2d(t):  # (T, N, E) -> (N*T, E), row = n*T + t
        return jnp.transpose(t, (1, 0, 2)).reshape(-1, E)

    x = to2d(query)
    qp = to2d(qpos)
    mem2 = to2d(memory)
    # Layer-invariant cross-attn inputs computed ONCE (bf16 = MXU operand dtype).
    if memory_pos is None:
        memk = mem2.astype(_BF16)
    else:
        memk = (mem2 + to2d(memory_pos)).astype(_BF16)
    memv = mem2.astype(_BF16)

    for p in layer_params:
        x = decoder_layer(x, qp, memk, memv, p, L=L, S=S, N=N, H=num_heads, D=D,
                          pre_norm=is_before_norm)

    if final_norm is not None:
        x = layernorm_op(x, final_norm["g"], final_norm["b"])

    return jnp.transpose(x.reshape(N, L, E), (1, 0, 2))


# ----------------------------- main -----------------------------

if __name__ == "__main__":
    embed_dim = 32
    num_heads = 4
    ffn_hidden_dim = 64
    num_layers = 2
    L, S, B = 8, 8, 2   # target seq, memory seq, batch

    root = jax.random.PRNGKey(0)
    kp, kq, km, kqp, kmp = jax.random.split(root, 5)

    raw = init_raw_layer_params(kp, embed_dim, num_heads, ffn_hidden_dim)
    layer = prepare_layer_params(raw, embed_dim, num_heads)
    # PyTorch clone_layer deep-copies one layer: all layers start with identical params.
    layer_params = [layer for _ in range(num_layers)]
    final_norm = {"g": jnp.ones((1, embed_dim), jnp.float32),
                  "b": jnp.zeros((1, embed_dim), jnp.float32)}

    query = jax.random.normal(kq, (L, B, embed_dim), jnp.float32)
    memory = jax.random.normal(km, (S, B, embed_dim), jnp.float32)
    query_pos = 0.1 * jax.random.normal(kqp, (L, B, embed_dim), jnp.float32)
    memory_pos = 0.1 * jax.random.normal(kmp, (S, B, embed_dim), jnp.float32)

    out = transformer_decoder(layer_params, final_norm, query, memory,
                              query_pos, memory_pos,
                              num_heads=num_heads, is_before_norm=False)
    out = jax.block_until_ready(out)
    assert out.shape == (L, B, embed_dim) and bool(jnp.all(jnp.isfinite(out)))
    print("KERNEL_OK")
</pallas_src>

<mosaic_0001>
module attributes {stable_mosaic.version = 11 : i64} {
  func.func @layernorm_kernel(%arg0: memref<16x32xf32, #tpu.memory_space<vmem>>, %arg1: memref<1x32xf32, #tpu.memory_space<vmem>>, %arg2: memref<1x32xf32, #tpu.memory_space<vmem>>, %arg3: memref<16x32xf32, #tpu.memory_space<vmem>>) attributes {dimension_semantics = [], scalar_prefetch = 0 : i64, scratch_operands = 0 : i64, tpu.core_type = #tpu.core_type<tc>} {
    %c0 = arith.constant 0 : index
    %c0_0 = arith.constant 0 : index
    %0 = vector.load %arg0[%c0, %c0_0] : memref<16x32xf32, #tpu.memory_space<vmem>>, vector<16x32xf32>
    %c0_1 = arith.constant 0 : index
    %c0_2 = arith.constant 0 : index
    %1 = vector.load %arg1[%c0_1, %c0_2] : memref<1x32xf32, #tpu.memory_space<vmem>>, vector<1x32xf32>
    %c0_3 = arith.constant 0 : index
    %c0_4 = arith.constant 0 : index
    %2 = vector.load %arg2[%c0_3, %c0_4] : memref<1x32xf32, #tpu.memory_space<vmem>>, vector<1x32xf32>
    %cst = arith.constant dense<0.000000e+00> : vector<16xf32>
    %3 = vector.multi_reduction <add>, %0, %cst [1] : vector<16x32xf32> to vector<16xf32>
    %4 = vector.shape_cast %3 : vector<16xf32> to vector<16x1xf32>
    %cst_5 = arith.constant 3.200000e+01 : f32
    %5 = vector.broadcast %cst_5 : f32 to vector<16x1xf32>
    %6 = arith.divf %4, %5 : vector<16x1xf32>
    %7 = vector.broadcast %6 : vector<16x1xf32> to vector<16x32xf32>
    %8 = arith.subf %0, %7 : vector<16x32xf32>
    %9 = arith.mulf %8, %8 : vector<16x32xf32>
    %cst_6 = arith.constant dense<0.000000e+00> : vector<16xf32>
    %10 = vector.multi_reduction <add>, %9, %cst_6 [1] : vector<16x32xf32> to vector<16xf32>
    %11 = vector.shape_cast %10 : vector<16xf32> to vector<16x1xf32>
    %cst_7 = arith.constant 3.200000e+01 : f32
    %12 = vector.broadcast %cst_7 : f32 to vector<16x1xf32>
    %13 = arith.divf %11, %12 : vector<16x1xf32>
    %14 = vector.broadcast %6 : vector<16x1xf32> to vector<16x32xf32>
    %15 = arith.subf %0, %14 : vector<16x32xf32>
    %cst_8 = arith.constant 9.99999974E-6 : f32
    %16 = vector.broadcast %cst_8 : f32 to vector<16x1xf32>
    %17 = arith.addf %13, %16 : vector<16x1xf32>
    %18 = math.rsqrt %17 : vector<16x1xf32>
    %19 = vector.broadcast %18 : vector<16x1xf32> to vector<16x32xf32>
    %20 = arith.mulf %15, %19 : vector<16x32xf32>
    %21 = vector.broadcast %1 : vector<1x32xf32> to vector<16x32xf32>
    %22 = arith.mulf %20, %21 : vector<16x32xf32>
    %23 = vector.broadcast %2 : vector<1x32xf32> to vector<16x32xf32>
    %24 = arith.addf %22, %23 : vector<16x32xf32>
    %c0_9 = arith.constant 0 : index
    %c0_10 = arith.constant 0 : index
    %25 = vector.load %arg3[%c0_9, %c0_10] : memref<16x32xf32, #tpu.memory_space<vmem>>, vector<16x32xf32>
    tpu.vector_store %arg3[%c0_9, %c0_10], %24 {strides = array<i32>} : memref<16x32xf32, #tpu.memory_space<vmem>>, vector<16x32xf32>,
    return
  }
}

module attributes {stable_mosaic.version = 11 : i64} {
  func.func @decoder_layer_kernel(%arg0: memref<16x32xf32, #tpu.memory_space<vmem>>, %arg1: memref<16x32xf32, #tpu.memory_space<vmem>>, %arg2: memref<16x32xbf16, #tpu.memory_space<vmem>>, %arg3: memref<16x32xbf16, #tpu.memory_space<vmem>>, %arg4: memref<32x96xbf16, #tpu.memory_space<vmem>>, %arg5: memref<1x96xf32, #tpu.memory_space<vmem>>, %arg6: memref<32x32xbf16, #tpu.memory_space<vmem>>, %arg7: memref<1x32xf32, #tpu.memory_space<vmem>>, %arg8: memref<32x96xbf16, #tpu.memory_space<vmem>>, %arg9: memref<1x96xf32, #tpu.memory_space<vmem>>, %arg10: memref<32x32xbf16, #tpu.memory_space<vmem>>, %arg11: memref<1x32xf32, #tpu.memory_space<vmem>>, %arg12: memref<32x64xbf16, #tpu.memory_space<vmem>>, %arg13: memref<1x64xf32, #tpu.memory_space<vmem>>, %arg14: memref<64x32xbf16, #tpu.memory_space<vmem>>, %arg15: memref<1x32xf32, #tpu.memory_space<vmem>>, %arg16: memref<1x32xf32, #tpu.memory_space<vmem>>, %arg17: memref<1x32xf32, #tpu.memory_space<vmem>>, %arg18: memref<1x32xf32, #tpu.memory_space<vmem>>, %arg19: memref<1x32xf32, #tpu.memory_space<vmem>>, %arg20: memref<1x32xf32, #tpu.memory_space<vmem>>, %arg21: memref<1x32xf32, #tpu.memory_space<vmem>>, %arg22: memref<16x32xf32, #tpu.memory_space<vmem>>) attributes {dimension_semantics = [], scalar_prefetch = 0 : i64, scratch_operands = 0 : i64, tpu.core_type = #tpu.core_type<tc>} {
    %c0 = arith.constant 0 : index
    %c0_0 = arith.constant 0 : index
    %0 = vector.load %arg0[%c0, %c0_0] : memref<16x32xf32, #tpu.memory_space<vmem>>, vector<16x32xf32>
    %c0_1 = arith.constant 0 : index
    %c0_2 = arith.constant 0 : index
    %1 = vector.load %arg1[%c0_1, %c0_2] : memref<16x32xf32, #tpu.memory_space<vmem>>, vector<16x32xf32>
    %c0_3 = arith.constant 0 : index
    %c0_4 = arith.constant 0 : index
    %2 = vector.load %arg2[%c0_3, %c0_4] : memref<16x32xbf16, #tpu.memory_space<vmem>>, vector<16x32xbf16>
    %c0_5 = arith.constant 0 : index
    %c0_6 = arith.constant 0 : index
    %3 = vector.load %arg3[%c0_5, %c0_6] : memref<16x32xbf16, #tpu.memory_space<vmem>>, vector<16x32xbf16>
    %c0_7 = arith.constant 0 : index
    %c0_8 = arith.constant 0 : index
    %4 = vector.load %arg16[%c0_7, %c0_8] : memref<1x32xf32, #tpu.memory_space<vmem>>, vector<1x32xf32>
    %c0_9 = arith.constant 0 : index
    %c0_10 = arith.constant 0 : index
    %5 = vector.load %arg17[%c0_9, %c0_10] : memref<1x32xf32, #tpu.memory_space<vmem>>, vector<1x32xf32>
    %c0_11 = arith.constant 0 : index
    %c0_12 = arith.constant 0 : index
    %6 = vector.load %arg18[%c0_11, %c0_12] : memref<1x32xf32, #tpu.memory_space<vmem>>, vector<1x32xf32>
    %c0_13 = arith.constant 0 : index
    %c0_14 = arith.constant 0 : index
    %7 = vector.load %arg19[%c0_13, %c0_14] : memref<1x32xf32, #tpu.memory_space<vmem>>, vector<1x32xf32>
    %c0_15 = arith.constant 0 : index
    %c0_16 = arith.constant 0 : index
    %8 = vector.load %arg20[%c0_15, %c0_16] : memref<1x32xf32, #tpu.memory_space<vmem>>, vector<1x32xf32>
    %c0_17 = arith.constant 0 : index
    %c0_18 = arith.constant 0 : index
    %9 = vector.load %arg21[%c0_17, %c0_18] : memref<1x32xf32, #tpu.memory_space<vmem>>, vector<1x32xf32>
    %10 = arith.addf %0, %1 : vector<16x32xf32>
    %c0_19 = arith.constant 0 : index
    %c0_20 = arith.constant 0 : index
    %11 = vector.load %arg4[%c0_19, %c0_20] : memref<32x96xbf16, #tpu.memory_space<vmem>>, vector<32x96xbf16>
    %c0_21 = arith.constant 0 : index
    %c0_22 = arith.constant 0 : index
    %12 = vector.load %arg5[%c0_21, %c0_22] : memref<1x96xf32, #tpu.memory_space<vmem>>, vector<1x96xf32>
    %c0_23 = arith.constant 0 : index
    %c0_24 = arith.constant 0 : index
    %13 = vector.load %arg6[%c0_23, %c0_24] : memref<32x32xbf16, #tpu.memory_space<vmem>>, vector<32x32xbf16>
    %c0_25 = arith.constant 0 : index
    %c0_26 = arith.constant 0 : index
    %14 = vector.load %arg7[%c0_25, %c0_26] : memref<1x32xf32, #tpu.memory_space<vmem>>, vector<1x32xf32>
    %15 = arith.truncf %10 : vector<16x32xf32> to vector<16x32xbf16>
    %16 = vector.extract_strided_slice %11 {offsets = [0, 0], sizes = [32, 64], strides = [1, 1]} : vector<32x96xbf16> to vector<32x64xbf16>
    %cst = arith.constant dense<0.000000e+00> : vector<16x64xf32>
    %17 = tpu.matmul %15, %16, %cst {dimension_numbers = #tpu.dot_dimension_numbers<[1], [0], [0], [1], [0, 0, 1, 1], [], []>} : vector<16x32xbf16>, vector<32x64xbf16>, vector<16x64xf32> -> vector<16x64xf32>
    %18 = vector.extract_strided_slice %12 {offsets = [0, 0], sizes = [1, 64], strides = [1, 1]} : vector<1x96xf32> to vector<1x64xf32>
    %19 = vector.broadcast %18 : vector<1x64xf32> to vector<16x64xf32>
    %20 = arith.addf %17, %19 : vector<16x64xf32>
    %21 = vector.extract_strided_slice %20 {offsets = [0, 0], sizes = [16, 32], strides = [1, 1]} : vector<16x64xf32> to vector<16x32xf32>
    %22 = vector.extract_strided_slice %20 {offsets = [0, 32], sizes = [16, 32], strides = [1, 1]} : vector<16x64xf32> to vector<16x32xf32>
    %23 = arith.truncf %0 : vector<16x32xf32> to vector<16x32xbf16>
    %24 = vector.extract_strided_slice %11 {offsets = [0, 64], sizes = [32, 32], strides = [1, 1]} : vector<32x96xbf16> to vector<32x32xbf16>
    %cst_27 = arith.constant dense<0.000000e+00> : vector<16x32xf32>
    %25 = tpu.matmul %23, %24, %cst_27 {dimension_numbers = #tpu.dot_dimension_numbers<[1], [0], [0], [1], [0, 0, 1, 1], [], []>} : vector<16x32xbf16>, vector<32x32xbf16>, vector<16x32xf32> -> vector<16x32xf32>
    %26 = vector.extract_strided_slice %12 {offsets = [0, 64], sizes = [1, 32], strides = [1, 1]} : vector<1x96xf32> to vector<1x32xf32>
    %27 = vector.broadcast %26 : vector<1x32xf32> to vector<16x32xf32>
    %28 = arith.addf %25, %27 : vector<16x32xf32>
    %29 = vector.extract_strided_slice %21 {offsets = [0, 0], sizes = [16, 8], strides = [1, 1]} : vector<16x32xf32> to vector<16x8xf32>
    %30 = arith.truncf %29 : vector<16x8xf32> to vector<16x8xbf16>
    %31 = vector.shape_cast %30 : vector<16x8xbf16> to vector<2x8x8xbf16>
    %32 = vector.extract_strided_slice %22 {offsets = [0, 0], sizes = [16, 8], strides = [1, 1]} : vector<16x32xf32> to vector<16x8xf32>
    %33 = arith.truncf %32 : vector<16x8xf32> to vector<16x8xbf16>
    %34 = vector.shape_cast %33 : vector<16x8xbf16> to vector<2x8x8xbf16>
    %35 = vector.extract_strided_slice %28 {offsets = [0, 0], sizes = [16, 8], strides = [1, 1]} : vector<16x32xf32> to vector<16x8xf32>
    %36 = arith.truncf %35 : vector<16x8xf32> to vector<16x8xbf16>
    %37 = vector.shape_cast %36 : vector<16x8xbf16> to vector<2x8x8xbf16>
    "tpu.trace_start"() <{level = 10 : i32, message = "nqd,nkd->nqk"}> : () -> ()
    %cst_28 = arith.constant dense<0.000000e+00> : vector<2x8x8xf32>
    %38 = tpu.matmul %31, %34, %cst_28 {dimension_numbers = #tpu.dot_dimension_numbers<[2], [2], [1], [1], [0, 0, 0, 1, 1, 1], [0], [0]>} : vector<2x8x8xbf16>, vector<2x8x8xbf16>, vector<2x8x8xf32> -> vector<2x8x8xf32>
    "tpu.trace_stop"() : () -> ()
    %cst_29 = arith.constant dense<0xFF800000> : vector<2x8xf32>
    %39 = vector.multi_reduction <maximumf>, %38, %cst_29 [2] : vector<2x8x8xf32> to vector<2x8xf32>
    %40 = vector.shape_cast %39 : vector<2x8xf32> to vector<2x8x1xf32>
    %41 = vector.broadcast %40 : vector<2x8x1xf32> to vector<2x8x8xf32>
    %42 = arith.subf %38, %41 : vector<2x8x8xf32>
    %43 = math.exp %42 : vector<2x8x8xf32>
    %cst_30 = arith.constant dense<0.000000e+00> : vector<2x8xf32>
    %44 = vector.multi_reduction <add>, %43, %cst_30 [2] : vector<2x8x8xf32> to vector<2x8xf32>
    %45 = vector.shape_cast %44 : vector<2x8xf32> to vector<2x8x1xf32>
    %46 = vector.broadcast %45 : vector<2x8x1xf32> to vector<2x8x8xf32>
    %47 = arith.divf %43, %46 : vector<2x8x8xf32>
    %48 = arith.truncf %47 : vector<2x8x8xf32> to vector<2x8x8xbf16>
    "tpu.trace_start"() <{level = 10 : i32, message = "nqk,nkd->nqd"}> : () -> ()
    %cst_31 = arith.constant dense<0.000000e+00> : vector<2x8x8xf32>
    %49 = tpu.matmul %48, %37, %cst_31 {dimension_numbers = #tpu.dot_dimension_numbers<[2], [1], [1], [2], [0, 0, 0, 1, 1, 2], [0], [0]>} : vector<2x8x8xbf16>, vector<2x8x8xbf16>, vector<2x8x8xf32> -> vector<2x8x8xf32>
    "tpu.trace_stop"() : () -> ()
    %50 = vector.shape_cast %49 : vector<2x8x8xf32> to vector<16x8xf32>
    %51 = vector.extract_strided_slice %21 {offsets = [0, 8], sizes = [16, 8], strides = [1, 1]} : vector<16x32xf32> to vector<16x8xf32>
    %52 = arith.truncf %51 : vector<16x8xf32> to vector<16x8xbf16>
    %53 = vector.shape_cast %52 : vector<16x8xbf16> to vector<2x8x8xbf16>
    %54 = vector.extract_strided_slice %22 {offsets = [0, 8], sizes = [16, 8], strides = [1, 1]} : vector<16x32xf32> to vector<16x8xf32>
    %55 = arith.truncf %54 : vector<16x8xf32> to vector<16x8xbf16>
    %56 = vector.shape_cast %55 : vector<16x8xbf16> to vector<2x8x8xbf16>
    %57 = vector.extract_strided_slice %28 {offsets = [0, 8], sizes = [16, 8], strides = [1, 1]} : vector<16x32xf32> to vector<16x8xf32>
    %58 = arith.truncf %57 : vector<16x8xf32> to vector<16x8xbf16>
    %59 = vector.shape_cast %58 : vector<16x8xbf16> to vector<2x8x8xbf16>
    "tpu.trace_start"() <{level = 10 : i32, message = "nqd,nkd->nqk"}> : () -> ()
    %cst_32 = arith.constant dense<0.000000e+00> : vector<2x8x8xf32>
    %60 = tpu.matmul %53, %56, %cst_32 {dimension_numbers = #tpu.dot_dimension_numbers<[2], [2], [1], [1], [0, 0, 0, 1, 1, 1], [0], [0]>} : vector<2x8x8xbf16>, vector<2x8x8xbf16>, vector<2x8x8xf32> -> vector<2x8x8xf32>
    "tpu.trace_stop"() : () -> ()
    %cst_33 = arith.constant dense<0xFF800000> : vector<2x8xf32>
    %61 = vector.multi_reduction <maximumf>, %60, %cst_33 [2] : vector<2x8x8xf32> to vector<2x8xf32>
    %62 = vector.shape_cast %61 : vector<2x8xf32> to vector<2x8x1xf32>
    %63 = vector.broadcast %62 : vector<2x8x1xf32> to vector<2x8x8xf32>
    %64 = arith.subf %60, %63 : vector<2x8x8xf32>
    %65 = math.exp %64 : vector<2x8x8xf32>
    %cst_34 = arith.constant dense<0.000000e+00> : vector<2x8xf32>
    %66 = vector.multi_reduction <add>, %65, %cst_34 [2] : vector<2x8x8xf32> to vector<2x8xf32>
    %67 = vector.shape_cast %66 : vector<2x8xf32> to vector<2x8x1xf32>
    %68 = vector.broadcast %67 : vector<2x8x1xf32> to vector<2x8x8xf32>
    %69 = arith.divf %65, %68 : vector<2x8x8xf32>
    %70 = arith.truncf %69 : vector<2x8x8xf32> to vector<2x8x8xbf16>
    "tpu.trace_start"() <{level = 10 : i32, message = "nqk,nkd->nqd"}> : () -> ()
    %cst_35 = arith.constant dense<0.000000e+00> : vector<2x8x8xf32>
    %71 = tpu.matmul %70, %59, %cst_35 {dimension_numbers = #tpu.dot_dimension_numbers<[2], [1], [1], [2], [0, 0, 0, 1, 1, 2], [0], [0]>} : vector<2x8x8xbf16>, vector<2x8x8xbf16>, vector<2x8x8xf32> -> vector<2x8x8xf32>
    "tpu.trace_stop"() : () -> ()
    %72 = vector.shape_cast %71 : vector<2x8x8xf32> to vector<16x8xf32>
    %73 = vector.extract_strided_slice %21 {offsets = [0, 16], sizes = [16, 8], strides = [1, 1]} : vector<16x32xf32> to vector<16x8xf32>
    %74 = arith.truncf %73 : vector<16x8xf32> to vector<16x8xbf16>
    %75 = vector.shape_cast %74 : vector<16x8xbf16> to vector<2x8x8xbf16>
    %76 = vector.extract_strided_slice %22 {offsets = [0, 16], sizes = [16, 8], strides = [1, 1]} : vector<16x32xf32> to vector<16x8xf32>
    %77 = arith.truncf %76 : vector<16x8xf32> to vector<16x8xbf16>
    %78 = vector.shape_cast %77 : vector<16x8xbf16> to vector<2x8x8xbf16>
    %79 = vector.extract_strided_slice %28 {offsets = [0, 16], sizes = [16, 8], strides = [1, 1]} : vector<16x32xf32> to vector<16x8xf32>
    %80 = arith.truncf %79 : vector<16x8xf32> to vector<16x8xbf16>
    %81 = vector.shape_cast %80 : vector<16x8xbf16> to vector<2x8x8xbf16>
    "tpu.trace_start"() <{level = 10 : i32, message = "nqd,nkd->nqk"}> : () -> ()
    %cst_36 = arith.constant dense<0.000000e+00> : vector<2x8x8xf32>
    %82 = tpu.matmul %75, %78, %cst_36 {dimension_numbers = #tpu.dot_dimension_numbers<[2], [2], [1], [1], [0, 0, 0, 1, 1, 1], [0], [0]>} : vector<2x8x8xbf16>, vector<2x8x8xbf16>, vector<2x8x8xf32> -> vector<2x8x8xf32>
    "tpu.trace_stop"() : () -> ()
    %cst_37 = arith.constant dense<0xFF800000> : vector<2x8xf32>
    %83 = vector.multi_reduction <maximumf>, %82, %cst_37 [2] : vector<2x8x8xf32> to vector<2x8xf32>
    %84 = vector.shape_cast %83 : vector<2x8xf32> to vector<2x8x1xf32>
    %85 = vector.broadcast %84 : vector<2x8x1xf32> to vector<2x8x8xf32>
    %86 = arith.subf %82, %85 : vector<2x8x8xf32>
    %87 = math.exp %86 : vector<2x8x8xf32>
    %cst_38 = arith.constant dense<0.000000e+00> : vector<2x8xf32>
    %88 = vector.multi_reduction <add>, %87, %cst_38 [2] : vector<2x8x8xf32> to vector<2x8xf32>
    %89 = vector.shape_cast %88 : vector<2x8xf32> to vector<2x8x1xf32>
    %90 = vector.broadcast %89 : vector<2x8x1xf32> to vector<2x8x8xf32>
    %91 = arith.divf %87, %90 : vector<2x8x8xf32>
    %92 = arith.truncf %91 : vector<2x8x8xf32> to vector<2x8x8xbf16>
    "tpu.trace_start"() <{level = 10 : i32, message = "nqk,nkd->nqd"}> : () -> ()
    %cst_39 = arith.constant dense<0.000000e+00> : vector<2x8x8xf32>
    %93 = tpu.matmul %92, %81, %cst_39 {dimension_numbers = #tpu.dot_dimension_numbers<[2], [1], [1], [2], [0, 0, 0, 1, 1, 2], [0], [0]>} : vector<2x8x8xbf16>, vector<2x8x8xbf16>, vector<2x8x8xf32> -> vector<2x8x8xf32>
    "tpu.trace_stop"() : () -> ()
    %94 = vector.shape_cast %93 : vector<2x8x8xf32> to vector<16x8xf32>
    %95 = vector.extract_strided_slice %21 {offsets = [0, 24], sizes = [16, 8], strides = [1, 1]} : vector<16x32xf32> to vector<16x8xf32>
    %96 = arith.truncf %95 : vector<16x8xf32> to vector<16x8xbf16>
    %97 = vector.shape_cast %96 : vector<16x8xbf16> to vector<2x8x8xbf16>
    %98 = vector.extract_strided_slice %22 {offsets = [0, 24], sizes = [16, 8], strides = [1, 1]} : vector<16x32xf32> to vector<16x8xf32>
    %99 = arith.truncf %98 : vector<16x8xf32> to vector<16x8xbf16>
    %100 = vector.shape_cast %99 : vector<16x8xbf16> to vector<2x8x8xbf16>
    %101 = vector.extract_strided_slice %28 {offsets = [0, 24], sizes = [16, 8], strides = [1, 1]} : vector<16x32xf32> to vector<16x8xf32>
    %102 = arith.truncf %101 : vector<16x8xf32> to vector<16x8xbf16>
    %103 = vector.shape_cast %102 : vector<16x8xbf16> to vector<2x8x8xbf16>
    "tpu.trace_start"() <{level = 10 : i32, message = "nqd,nkd->nqk"}> : () -> ()
    %cst_40 = arith.constant dense<0.000000e+00> : vector<2x8x8xf32>
    %104 = tpu.matmul %97, %100, %cst_40 {dimension_numbers = #tpu.dot_dimension_numbers<[2], [2], [1], [1], [0, 0, 0, 1, 1, 1], [0], [0]>} : vector<2x8x8xbf16>, vector<2x8x8xbf16>, vector<2x8x8xf32> -> vector<2x8x8xf32>
    "tpu.trace_stop"() : () -> ()
    %cst_41 = arith.constant dense<0xFF800000> : vector<2x8xf32>
    %105 = vector.multi_reduction <maximumf>, %104, %cst_41 [2] : vector<2x8x8xf32> to vector<2x8xf32>
    %106 = vector.shape_cast %105 : vector<2x8xf32> to vector<2x8x1xf32>
    %107 = vector.broadcast %106 : vector<2x8x1xf32> to vector<2x8x8xf32>
    %108 = arith.subf %104, %107 : vector<2x8x8xf32>
    %109 = math.exp %108 : vector<2x8x8xf32>
    %cst_42 = arith.constant dense<0.000000e+00> : vector<2x8xf32>
    %110 = vector.multi_reduction <add>, %109, %cst_42 [2] : vector<2x8x8xf32> to vector<2x8xf32>
    %111 = vector.shape_cast %110 : vector<2x8xf32> to vector<2x8x1xf32>
    %112 = vector.broadcast %111 : vector<2x8x1xf32> to vector<2x8x8xf32>
    %113 = arith.divf %109, %112 : vector<2x8x8xf32>
    %114 = arith.truncf %113 : vector<2x8x8xf32> to vector<2x8x8xbf16>
    "tpu.trace_start"() <{level = 10 : i32, message = "nqk,nkd->nqd"}> : () -> ()
    %cst_43 = arith.constant dense<0.000000e+00> : vector<2x8x8xf32>
    %115 = tpu.matmul %114, %103, %cst_43 {dimension_numbers = #tpu.dot_dimension_numbers<[2], [1], [1], [2], [0, 0, 0, 1, 1, 2], [0], [0]>} : vector<2x8x8xbf16>, vector<2x8x8xbf16>, vector<2x8x8xf32> -> vector<2x8x8xf32>
    "tpu.trace_stop"() : () -> ()
    %116 = vector.shape_cast %115 : vector<2x8x8xf32> to vector<16x8xf32>
    %117 = tpu.concatenate %50, %72, %94, %116 in 1 : vector<16x8xf32>, vector<16x8xf32>, vector<16x8xf32>, vector<16x8xf32> -> vector<16x32xf32>
    %118 = arith.truncf %117 : vector<16x32xf32> to vector<16x32xbf16>
    %cst_44 = arith.constant dense<0.000000e+00> : vector<16x32xf32>
    %119 = tpu.matmul %118, %13, %cst_44 {dimension_numbers = #tpu.dot_dimension_numbers<[1], [0], [0], [1], [0, 0, 1, 1], [], []>} : vector<16x32xbf16>, vector<32x32xbf16>, vector<16x32xf32> -> vector<16x32xf32>
    %120 = vector.broadcast %14 : vector<1x32xf32> to vector<16x32xf32>
    %121 = arith.addf %119, %120 : vector<16x32xf32>
    %122 = arith.addf %0, %121 : vector<16x32xf32>
    %cst_45 = arith.constant dense<0.000000e+00> : vector<16xf32>
    %123 = vector.multi_reduction <add>, %122, %cst_45 [1] : vector<16x32xf32> to vector<16xf32>
    %124 = vector.shape_cast %123 : vector<16xf32> to vector<16x1xf32>
    %cst_46 = arith.constant 3.200000e+01 : f32
    %125 = vector.broadcast %cst_46 : f32 to vector<16x1xf32>
    %126 = arith.divf %124, %125 : vector<16x1xf32>
    %127 = vector.broadcast %126 : vector<16x1xf32> to vector<16x32xf32>
    %128 = arith.subf %122, %127 : vector<16x32xf32>
    %129 = arith.mulf %128, %128 : vector<16x32xf32>
    %cst_47 = arith.constant dense<0.000000e+00> : vector<16xf32>
    %130 = vector.multi_reduction <add>, %129, %cst_47 [1] : vector<16x32xf32> to vector<16xf32>
    %131 = vector.shape_cast %130 : vector<16xf32> to vector<16x1xf32>
    %cst_48 = arith.constant 3.200000e+01 : f32
    %132 = vector.broadcast %cst_48 : f32 to vector<16x1xf32>
    %133 = arith.divf %131, %132 : vector<16x1xf32>
    %134 = vector.broadcast %126 : vector<16x1xf32> to vector<16x32xf32>
    %135 = arith.subf %122, %134 : vector<16x32xf32>
    %cst_49 = arith.constant 9.99999974E-6 : f32
    %136 = vector.broadcast %cst_49 : f32 to vector<16x1xf32>
    %137 = arith.addf %133, %136 : vector<16x1xf32>
    %138 = math.rsqrt %137 : vector<16x1xf32>
    %139 = vector.broadcast %138 : vector<16x1xf32> to vector<16x32xf32>
    %140 = arith.mulf %135, %139 : vector<16x32xf32>
    %141 = vector.broadcast %4 : vector<1x32xf32> to vector<16x32xf32>
    %142 = arith.mulf %140, %141 : vector<16x32xf32>
    %143 = vector.broadcast %5 : vector<1x32xf32> to vector<16x32xf32>
    %144 = arith.addf %142, %143 : vector<16x32xf32>
    %145 = arith.addf %144, %1 : vector<16x32xf32>
    %c0_50 = arith.constant 0 : index
    %c0_51 = arith.constant 0 : index
    %146 = vector.load %arg8[%c0_50, %c0_51] : memref<32x96xbf16, #tpu.memory_space<vmem>>, vector<32x96xbf16>
    %c0_52 = arith.constant 0 : index
    %c0_53 = arith.constant 0 : index
    %147 = vector.load %arg9[%c0_52, %c0_53] : memref<1x96xf32, #tpu.memory_space<vmem>>, vector<1x96xf32>
    %c0_54 = arith.constant 0 : index
    %c0_55 = arith.constant 0 : index
    %148 = vector.load %arg10[%c0_54, %c0_55] : memref<32x32xbf16, #tpu.memory_space<vmem>>, vector<32x32xbf16>
    %c0_56 = arith.constant 0 : index
    %c0_57 = arith.constant 0 : index
    %149 = vector.load %arg11[%c0_56, %c0_57] : memref<1x32xf32, #tpu.memory_space<vmem>>, vector<1x32xf32>
    %150 = arith.truncf %145 : vector<16x32xf32> to vector<16x32xbf16>
    %151 = vector.extract_strided_slice %146 {offsets = [0, 0], sizes = [32, 32], strides = [1, 1]} : vector<32x96xbf16> to vector<32x32xbf16>
    %cst_58 = arith.constant dense<0.000000e+00> : vector<16x32xf32>
    %152 = tpu.matmul %150, %151, %cst_58 {dimension_numbers = #tpu.dot_dimension_numbers<[1], [0], [0], [1], [0, 0, 1, 1], [], []>} : vector<16x32xbf16>, vector<32x32xbf16>, vector<16x32xf32> -> vector<16x32xf32>
    %153 = vector.extract_strided_slice %147 {offsets = [0, 0], sizes = [1, 32], strides = [1, 1]} : vector<1x96xf32> to vector<1x32xf32>
    %154 = vector.broadcast %153 : vector<1x32xf32> to vector<16x32xf32>
    %155 = arith.addf %152, %154 : vector<16x32xf32>
    %156 = vector.extract_strided_slice %146 {offsets = [0, 32], sizes = [32, 32], strides = [1, 1]} : vector<32x96xbf16> to vector<32x32xbf16>
    %cst_59 = arith.constant dense<0.000000e+00> : vector<16x32xf32>
    %157 = tpu.matmul %2, %156, %cst_59 {dimension_numbers = #tpu.dot_dimension_numbers<[1], [0], [0], [1], [0, 0, 1, 1], [], []>} : vector<16x32xbf16>, vector<32x32xbf16>, vector<16x32xf32> -> vector<16x32xf32>
    %158 = vector.extract_strided_slice %147 {offsets = [0, 32], sizes = [1, 32], strides = [1, 1]} : vector<1x96xf32> to vector<1x32xf32>
    %159 = vector.broadcast %158 : vector<1x32xf32> to vector<16x32xf32>
    %160 = arith.addf %157, %159 : vector<16x32xf32>
    %161 = vector.extract_strided_slice %146 {offsets = [0, 64], sizes = [32, 32], strides = [1, 1]} : vector<32x96xbf16> to vector<32x32xbf16>
    %cst_60 = arith.constant dense<0.000000e+00> : vector<16x32xf32>
    %162 = tpu.matmul %3, %161, %cst_60 {dimension_numbers = #tpu.dot_dimension_numbers<[1], [0], [0], [1], [0, 0, 1, 1], [], []>} : vector<16x32xbf16>, vector<32x32xbf16>, vector<16x32xf32> -> vector<16x32xf32>
    %163 = vector.extract_strided_slice %147 {offsets = [0, 64], sizes = [1, 32], strides = [1, 1]} : vector<1x96xf32> to vector<1x32xf32>
    %164 = vector.broadcast %163 : vector<1x32xf32> to vector<16x32xf32>
    %165 = arith.addf %162, %164 : vector<16x32xf32>
    %166 = vector.extract_strided_slice %155 {offsets = [0, 0], sizes = [16, 8], strides = [1, 1]} : vector<16x32xf32> to vector<16x8xf32>
    %167 = arith.truncf %166 : vector<16x8xf32> to vector<16x8xbf16>
    %168 = vector.shape_cast %167 : vector<16x8xbf16> to vector<2x8x8xbf16>
    %169 = vector.extract_strided_slice %160 {offsets = [0, 0], sizes = [16, 8], strides = [1, 1]} : vector<16x32xf32> to vector<16x8xf32>
    %170 = arith.truncf %169 : vector<16x8xf32> to vector<16x8xbf16>
    %171 = vector.shape_cast %170 : vector<16x8xbf16> to vector<2x8x8xbf16>
    %172 = vector.extract_strided_slice %165 {offsets = [0, 0], sizes = [16, 8], strides = [1, 1]} : vector<16x32xf32> to vector<16x8xf32>
    %173 = arith.truncf %172 : vector<16x8xf32> to vector<16x8xbf16>
    %174 = vector.shape_cast %173 : vector<16x8xbf16> to vector<2x8x8xbf16>
    "tpu.trace_start"() <{level = 10 : i32, message = "nqd,nkd->nqk"}> : () -> ()
    %cst_61 = arith.constant dense<0.000000e+00> : vector<2x8x8xf32>
    %175 = tpu.matmul %168, %171, %cst_61 {dimension_numbers = #tpu.dot_dimension_numbers<[2], [2], [1], [1], [0, 0, 0, 1, 1, 1], [0], [0]>} : vector<2x8x8xbf16>, vector<2x8x8xbf16>, vector<2x8x8xf32> -> vector<2x8x8xf32>
    "tpu.trace_stop"() : () -> ()
    %cst_62 = arith.constant dense<0xFF800000> : vector<2x8xf32>
    %176 = vector.multi_reduction <maximumf>, %175, %cst_62 [2] : vector<2x8x8xf32> to vector<2x8xf32>
    %177 = vector.shape_cast %176 : vector<2x8xf32> to vector<2x8x1xf32>
    %178 = vector.broadcast %177 : vector<2x8x1xf32> to vector<2x8x8xf32>
    %179 = arith.subf %175, %178 : vector<2x8x8xf32>
    %180 = math.exp %179 : vector<2x8x8xf32>
    %cst_63 = arith.constant dense<0.000000e+00> : vector<2x8xf32>
    %181 = vector.multi_reduction <add>, %180, %cst_63 [2] : vector<2x8x8xf32> to vector<2x8xf32>
    %182 = vector.shape_cast %181 : vector<2x8xf32> to vector<2x8x1xf32>
    %183 = vector.broadcast %182 : vector<2x8x1xf32> to vector<2x8x8xf32>
    %184 = arith.divf %180, %183 : vector<2x8x8xf32>
    %185 = arith.truncf %184 : vector<2x8x8xf32> to vector<2x8x8xbf16>
    "tpu.trace_start"() <{level = 10 : i32, message = "nqk,nkd->nqd"}> : () -> ()
    %cst_64 = arith.constant dense<0.000000e+00> : vector<2x8x8xf32>
    %186 = tpu.matmul %185, %174, %cst_64 {dimension_numbers = #tpu.dot_dimension_numbers<[2], [1], [1], [2], [0, 0, 0, 1, 1, 2], [0], [0]>} : vector<2x8x8xbf16>, vector<2x8x8xbf16>, vector<2x8x8xf32> -> vector<2x8x8xf32>
    "tpu.trace_stop"() : () -> ()
    %187 = vector.shape_cast %186 : vector<2x8x8xf32> to vector<16x8xf32>
    %188 = vector.extract_strided_slice %155 {offsets = [0, 8], sizes = [16, 8], strides = [1, 1]} : vector<16x32xf32> to vector<16x8xf32>
    %189 = arith.truncf %188 : vector<16x8xf32> to vector<16x8xbf16>
    %190 = vector.shape_cast %189 : vector<16x8xbf16> to vector<2x8x8xbf16>
    %191 = vector.extract_strided_slice %160 {offsets = [0, 8], sizes = [16, 8], strides = [1, 1]} : vector<16x32xf32> to vector<16x8xf32>
    %192 = arith.truncf %191 : vector<16x8xf32> to vector<16x8xbf16>
    %193 = vector.shape_cast %192 : vector<16x8xbf16> to vector<2x8x8xbf16>
    %194 = vector.extract_strided_slice %165 {offsets = [0, 8], sizes = [16, 8], strides = [1, 1]} : vector<16x32xf32> to vector<16x8xf32>
    %195 = arith.truncf %194 : vector<16x8xf32> to vector<16x8xbf16>
    %196 = vector.shape_cast %195 : vector<16x8xbf16> to vector<2x8x8xbf16>
    "tpu.trace_start"() <{level = 10 : i32, message = "nqd,nkd->nqk"}> : () -> ()
    %cst_65 = arith.constant dense<0.000000e+00> : vector<2x8x8xf32>
    %197 = tpu.matmul %190, %193, %cst_65 {dimension_numbers = #tpu.dot_dimension_numbers<[2], [2], [1], [1], [0, 0, 0, 1, 1, 1], [0], [0]>} : vector<2x8x8xbf16>, vector<2x8x8xbf16>, vector<2x8x8xf32> -> vector<2x8x8xf32>
    "tpu.trace_stop"() : () -> ()
    %cst_66 = arith.constant dense<0xFF800000> : vector<2x8xf32>
    %198 = vector.multi_reduction <maximumf>, %197, %cst_66 [2] : vector<2x8x8xf32> to vector<2x8xf32>
    %199 = vector.shape_cast %198 : vector<2x8xf32> to vector<2x8x1xf32>
    %200 = vector.broadcast %199 : vector<2x8x1xf32> to vector<2x8x8xf32>
    %201 = arith.subf %197, %200 : vector<2x8x8xf32>
    %202 = math.exp %201 : vector<2x8x8xf32>
    %cst_67 = arith.constant dense<0.000000e+00> : vector<2x8xf32>
    %203 = vector.multi_reduction <add>, %202, %cst_67 [2] : vector<2x8x8xf32> to vector<2x8xf32>
    %204 = vector.shape_cast %203 : vector<2x8xf32> to vector<2x8x1xf32>
    %205 = vector.broadcast %204 : vector<2x8x1xf32> to vector<2x8x8xf32>
    %206 = arith.divf %202, %205 : vector<2x8x8xf32>
    %207 = arith.truncf %206 : vector<2x8x8xf32> to vector<2x8x8xbf16>
    "tpu.trace_start"() <{level = 10 : i32, message = "nqk,nkd->nqd"}> : () -> ()
    %cst_68 = arith.constant dense<0.000000e+00> : vector<2x8x8xf32>
    %208 = tpu.matmul %207, %196, %cst_68 {dimension_numbers = #tpu.dot_dimension_numbers<[2], [1], [1], [2], [0, 0, 0, 1, 1, 2], [0], [0]>} : vector<2x8x8xbf16>, vector<2x8x8xbf16>, vector<2x8x8xf32> -> vector<2x8x8xf32>
    "tpu.trace_stop"() : () -> ()
    %209 = vector.shape_cast %208 : vector<2x8x8xf32> to vector<16x8xf32>
    %210 = vector.extract_strided_slice %155 {offsets = [0, 16], sizes = [16, 8], strides = [1, 1]} : vector<16x32xf32> to vector<16x8xf32>
    %211 = arith.truncf %210 : vector<16x8xf32> to vector<16x8xbf16>
    %212 = vector.shape_cast %211 : vector<16x8xbf16> to vector<2x8x8xbf16>
    %213 = vector.extract_strided_slice %160 {offsets = [0, 16], sizes = [16, 8], strides = [1, 1]} : vector<16x32xf32> to vector<16x8xf32>
    %214 = arith.truncf %213 : vector<16x8xf32> to vector<16x8xbf16>
    %215 = vector.shape_cast %214 : vector<16x8xbf16> to vector<2x8x8xbf16>
    %216 = vector.extract_strided_slice %165 {offsets = [0, 16], sizes = [16, 8], strides = [1, 1]} : vector<16x32xf32> to vector<16x8xf32>
    %217 = arith.truncf %216 : vector<16x8xf32> to vector<16x8xbf16>
    %218 = vector.shape_cast %217 : vector<16x8xbf16> to vector<2x8x8xbf16>
    "tpu.trace_start"() <{level = 10 : i32, message = "nqd,nkd->nqk"}> : () -> ()
    %cst_69 = arith.constant dense<0.000000e+00> : vector<2x8x8xf32>
    %219 = tpu.matmul %212, %215, %cst_69 {dimension_numbers = #tpu.dot_dimension_numbers<[2], [2], [1], [1], [0, 0, 0, 1, 1, 1], [0], [0]>} : vector<2x8x8xbf16>, vector<2x8x8xbf16>, vector<2x8x8xf32> -> vector<2x8x8xf32>
    "tpu.trace_stop"() : () -> ()
    %cst_70 = arith.constant dense<0xFF800000> : vector<2x8xf32>
    %220 = vector.multi_reduction <maximumf>, %219, %cst_70 [2] : vector<2x8x8xf32> to vector<2x8xf32>
    %221 = vector.shape_cast %220 : vector<2x8xf32> to vector<2x8x1xf32>
    %222 = vector.broadcast %221 : vector<2x8x1xf32> to vector<2x8x8xf32>
    %223 = arith.subf %219, %222 : vector<2x8x8xf32>
    %224 = math.exp %223 : vector<2x8x8xf32>
    %cst_71 = arith.constant dense<0.000000e+00> : vector<2x8xf32>
    %225 = vector.multi_reduction <add>, %224, %cst_71 [2] : vector<2x8x8xf32> to vector<2x8xf32>
    %226 = vector.shape_cast %225 : vector<2x8xf32> to vector<2x8x1xf32>
    %227 = vector.broadcast %226 : vector<2x8x1xf32> to vector<2x8x8xf32>
    %228 = arith.divf %224, %227 : vector<2x8x8xf32>
    %229 = arith.truncf %228 : vector<2x8x8xf32> to vector<2x8x8xbf16>
    "tpu.trace_start"() <{level = 10 : i32, message = "nqk,nkd->nqd"}> : () -> ()
    %cst_72 = arith.constant dense<0.000000e+00> : vector<2x8x8xf32>
    %230 = tpu.matmul %229, %218, %cst_72 {dimension_numbers = #tpu.dot_dimension_numbers<[2], [1], [1], [2], [0, 0, 0, 1, 1, 2], [0], [0]>} : vector<2x8x8xbf16>, vector<2x8x8xbf16>, vector<2x8x8xf32> -> vector<2x8x8xf32>
    "tpu.trace_stop"() : () -> ()
    %231 = vector.shape_cast %230 : vector<2x8x8xf32> to vector<16x8xf32>
    %232 = vector.extract_strided_slice %155 {offsets = [0, 24], sizes = [16, 8], strides = [1, 1]} : vector<16x32xf32> to vector<16x8xf32>
    %233 = arith.truncf %232 : vector<16x8xf32> to vector<16x8xbf16>
    %234 = vector.shape_cast %233 : vector<16x8xbf16> to vector<2x8x8xbf16>
    %235 = vector.extract_strided_slice %160 {offsets = [0, 24], sizes = [16, 8], strides = [1, 1]} : vector<16x32xf32> to vector<16x8xf32>
    %236 = arith.truncf %235 : vector<16x8xf32> to vector<16x8xbf16>
    %237 = vector.shape_cast %236 : vector<16x8xbf16> to vector<2x8x8xbf16>
    %238 = vector.extract_strided_slice %165 {offsets = [0, 24], sizes = [16, 8], strides = [1, 1]} : vector<16x32xf32> to vector<16x8xf32>
    %239 = arith.truncf %238 : vector<16x8xf32> to vector<16x8xbf16>
    %240 = vector.shape_cast %239 : vector<16x8xbf16> to vector<2x8x8xbf16>
    "tpu.trace_start"() <{level = 10 : i32, message = "nqd,nkd->nqk"}> : () -> ()
    %cst_73 = arith.constant dense<0.000000e+00> : vector<2x8x8xf32>
    %241 = tpu.matmul %234, %237, %cst_73 {dimension_numbers = #tpu.dot_dimension_numbers<[2], [2], [1], [1], [0, 0, 0, 1, 1, 1], [0], [0]>} : vector<2x8x8xbf16>, vector<2x8x8xbf16>, vector<2x8x8xf32> -> vector<2x8x8xf32>
    "tpu.trace_stop"() : () -> ()
    %cst_74 = arith.constant dense<0xFF800000> : vector<2x8xf32>
    %242 = vector.multi_reduction <maximumf>, %241, %cst_74 [2] : vector<2x8x8xf32> to vector<2x8xf32>
    %243 = vector.shape_cast %242 : vector<2x8xf32> to vector<2x8x1xf32>
    %244 = vector.broadcast %243 : vector<2x8x1xf32> to vector<2x8x8xf32>
    %245 = arith.subf %241, %244 : vector<2x8x8xf32>
    %246 = math.exp %245 : vector<2x8x8xf32>
    %cst_75 = arith.constant dense<0.000000e+00> : vector<2x8xf32>
    %247 = vector.multi_reduction <add>, %246, %cst_75 [2] : vector<2x8x8xf32> to vector<2x8xf32>
    %248 = vector.shape_cast %247 : vector<2x8xf32> to vector<2x8x1xf32>
    %249 = vector.broadcast %248 : vector<2x8x1xf32> to vector<2x8x8xf32>
    %250 = arith.divf %246, %249 : vector<2x8x8xf32>
    %251 = arith.truncf %250 : vector<2x8x8xf32> to vector<2x8x8xbf16>
    "tpu.trace_start"() <{level = 10 : i32, message = "nqk,nkd->nqd"}> : () -> ()
    %cst_76 = arith.constant dense<0.000000e+00> : vector<2x8x8xf32>
    %252 = tpu.matmul %251, %240, %cst_76 {dimension_numbers = #tpu.dot_dimension_numbers<[2], [1], [1], [2], [0, 0, 0, 1, 1, 2], [0], [0]>} : vector<2x8x8xbf16>, vector<2x8x8xbf16>, vector<2x8x8xf32> -> vector<2x8x8xf32>
    "tpu.trace_stop"() : () -> ()
    %253 = vector.shape_cast %252 : vector<2x8x8xf32> to vector<16x8xf32>
    %254 = tpu.concatenate %187, %209, %231, %253 in 1 : vector<16x8xf32>, vector<16x8xf32>, vector<16x8xf32>, vector<16x8xf32> -> vector<16x32xf32>
    %255 = arith.truncf %254 : vector<16x32xf32> to vector<16x32xbf16>
    %cst_77 = arith.constant dense<0.000000e+00> : vector<16x32xf32>
    %256 = tpu.matmul %255, %148, %cst_77 {dimension_numbers = #tpu.dot_dimension_numbers<[1], [0], [0], [1], [0, 0, 1, 1], [], []>} : vector<16x32xbf16>, vector<32x32xbf16>, vector<16x32xf32> -> vector<16x32xf32>
    %257 = vector.broadcast %149 : vector<1x32xf32> to vector<16x32xf32>
    %258 = arith.addf %256, %257 : vector<16x32xf32>
    %259 = arith.addf %144, %258 : vector<16x32xf32>
    %cst_78 = arith.constant dense<0.000000e+00> : vector<16xf32>
    %260 = vector.multi_reduction <add>, %259, %cst_78 [1] : vector<16x32xf32> to vector<16xf32>
    %261 = vector.shape_cast %260 : vector<16xf32> to vector<16x1xf32>
    %cst_79 = arith.constant 3.200000e+01 : f32
    %262 = vector.broadcast %cst_79 : f32 to vector<16x1xf32>
    %263 = arith.divf %261, %262 : vector<16x1xf32>
    %264 = vector.broadcast %263 : vector<16x1xf32> to vector<16x32xf32>
    %265 = arith.subf %259, %264 : vector<16x32xf32>
    %266 = arith.mulf %265, %265 : vector<16x32xf32>
    %cst_80 = arith.constant dense<0.000000e+00> : vector<16xf32>
    %267 = vector.multi_reduction <add>, %266, %cst_80 [1] : vector<16x32xf32> to vector<16xf32>
    %268 = vector.shape_cast %267 : vector<16xf32> to vector<16x1xf32>
    %cst_81 = arith.constant 3.200000e+01 : f32
    %269 = vector.broadcast %cst_81 : f32 to vector<16x1xf32>
    %270 = arith.divf %268, %269 : vector<16x1xf32>
    %271 = vector.broadcast %263 : vector<16x1xf32> to vector<16x32xf32>
    %272 = arith.subf %259, %271 : vector<16x32xf32>
    %cst_82 = arith.constant 9.99999974E-6 : f32
    %273 = vector.broadcast %cst_82 : f32 to vector<16x1xf32>
    %274 = arith.addf %270, %273 : vector<16x1xf32>
    %275 = math.rsqrt %274 : vector<16x1xf32>
    %276 = vector.broadcast %275 : vector<16x1xf32> to vector<16x32xf32>
    %277 = arith.mulf %272, %276 : vector<16x32xf32>
    %278 = vector.broadcast %6 : vector<1x32xf32> to vector<16x32xf32>
    %279 = arith.mulf %277, %278 : vector<16x32xf32>
    %280 = vector.broadcast %7 : vector<1x32xf32> to vector<16x32xf32>
    %281 = arith.addf %279, %280 : vector<16x32xf32>
    %282 = arith.truncf %281 : vector<16x32xf32> to vector<16x32xbf16>
    %c0_83 = arith.constant 0 : index
    %c0_84 = arith.constant 0 : index
    %283 = vector.load %arg12[%c0_83, %c0_84] : memref<32x64xbf16, #tpu.memory_space<vmem>>, vector<32x64xbf16>
    %cst_85 = arith.constant dense<0.000000e+00> : vector<16x64xf32>
    %284 = tpu.matmul %282, %283, %cst_85 {dimension_numbers = #tpu.dot_dimension_numbers<[1], [0], [0], [1], [0, 0, 1, 1], [], []>} : vector<16x32xbf16>, vector<32x64xbf16>, vector<16x64xf32> -> vector<16x64xf32>
    %c0_86 = arith.constant 0 : index
    %c0_87 = arith.constant 0 : index
    %285 = vector.load %arg13[%c0_86, %c0_87] : memref<1x64xf32, #tpu.memory_space<vmem>>, vector<1x64xf32>
    %286 = vector.broadcast %285 : vector<1x64xf32> to vector<16x64xf32>
    %287 = arith.addf %284, %286 : vector<16x64xf32>
    %cst_88 = arith.constant 0.000000e+00 : f32
    %288 = vector.broadcast %cst_88 : f32 to vector<16x64xf32>
    %289 = arith.maximumf %287, %288 : vector<16x64xf32>
    %290 = arith.truncf %289 : vector<16x64xf32> to vector<16x64xbf16>
    %c0_89 = arith.constant 0 : index
    %c0_90 = arith.constant 0 : index
    %291 = vector.load %arg14[%c0_89, %c0_90] : memref<64x32xbf16, #tpu.memory_space<vmem>>, vector<64x32xbf16>
    %cst_91 = arith.constant dense<0.000000e+00> : vector<16x32xf32>
    %292 = tpu.matmul %290, %291, %cst_91 {dimension_numbers = #tpu.dot_dimension_numbers<[1], [0], [0], [1], [0, 0, 1, 1], [], []>} : vector<16x64xbf16>, vector<64x32xbf16>, vector<16x32xf32> -> vector<16x32xf32>
    %c0_92 = arith.constant 0 : index
    %c0_93 = arith.constant 0 : index
    %293 = vector.load %arg15[%c0_92, %c0_93] : memref<1x32xf32, #tpu.memory_space<vmem>>, vector<1x32xf32>
    %294 = vector.broadcast %293 : vector<1x32xf32> to vector<16x32xf32>
    %295 = arith.addf %292, %294 : vector<16x32xf32>
    %296 = arith.addf %281, %295 : vector<16x32xf32>
    %cst_94 = arith.constant dense<0.000000e+00> : vector<16xf32>
    %297 = vector.multi_reduction <add>, %296, %cst_94 [1] : vector<16x32xf32> to vector<16xf32>
    %298 = vector.shape_cast %297 : vector<16xf32> to vector<16x1xf32>
    %cst_95 = arith.constant 3.200000e+01 : f32
    %299 = vector.broadcast %cst_95 : f32 to vector<16x1xf32>
    %300 = arith.divf %298, %299 : vector<16x1xf32>
    %301 = vector.broadcast %300 : vector<16x1xf32> to vector<16x32xf32>
    %302 = arith.subf %296, %301 : vector<16x32xf32>
    %303 = arith.mulf %302, %302 : vector<16x32xf32>
    %cst_96 = arith.constant dense<0.000000e+00> : vector<16xf32>
    %304 = vector.multi_reduction <add>, %303, %cst_96 [1] : vector<16x32xf32> to vector<16xf32>
    %305 = vector.shape_cast %304 : vector<16xf32> to vector<16x1xf32>
    %cst_97 = arith.constant 3.200000e+01 : f32
    %306 = vector.broadcast %cst_97 : f32 to vector<16x1xf32>
    %307 = arith.divf %305, %306 : vector<16x1xf32>
    %308 = vector.broadcast %300 : vector<16x1xf32> to vector<16x32xf32>
    %309 = arith.subf %296, %308 : vector<16x32xf32>
    %cst_98 = arith.constant 9.99999974E-6 : f32
    %310 = vector.broadcast %cst_98 : f32 to vector<16x1xf32>
    %311 = arith.addf %307, %310 : vector<16x1xf32>
    %312 = math.rsqrt %311 : vector<16x1xf32>
    %313 = vector.broadcast %312 : vector<16x1xf32> to vector<16x32xf32>
    %314 = arith.mulf %309, %313 : vector<16x32xf32>
    %315 = vector.broadcast %8 : vector<1x32xf32> to vector<16x32xf32>
    %316 = arith.mulf %314, %315 : vector<16x32xf32>
    %317 = vector.broadcast %9 : vector<1x32xf32> to vector<16x32xf32>
    %318 = arith.addf %316, %317 : vector<16x32xf32>
    %c0_99 = arith.constant 0 : index
    %c0_100 = arith.constant 0 : index
    %319 = vector.load %arg22[%c0_99, %c0_100] : memref<16x32xf32, #tpu.memory_space<vmem>>, vector<16x32xf32>
    tpu.vector_store %arg22[%c0_99, %c0_100], %318 {strides = array<i32>} : memref<16x32xf32, #tpu.memory_space<vmem>>, vector<16x32xf32>,
    return
  }
}

</mosaic_0001>

<bundles_post_ra>
// kernel: transformer_decoder.5
= control target key start
LH: loop header
LB: loop body
LE: loop exit
PB: predicated region body
PF: predicated region fallthrough
CT: control target
= control target key end

     0   :  { %vm18_vm0 = vcmask 261120   ;;  %s118_s0 = inlined_call_operand.vmem [shape: f32[16,32], index: 0, kind: input, shape index: {}]   ;;  %s119_s1 = inlined_call_operand.vmem [shape: f32[1,32], index: 1, kind: input, shape index: {}]   ;;  %s120_s2 = inlined_call_operand.vmem [shape: f32[1,32], index: 2, kind: input, shape index: {}]   ;;  %s121_s3 = inlined_call_operand.vmem [shape: f32[16,32], index: 3, kind: output, shape index: {}]  }
   0x1   :  { %v14_v0 = vld [vmem:[%s118_s0] sm:$0xff]  ;;  %v15_v1 = vld [vmem:[%s118_s0 + $0x8] sm:$0xff] }
   0x2   :  { %v19_v2 = vsel %vm18_vm0, %v14_v0, 0.0  ;;  %v22_v3 = vsel %vm18_vm0, %v15_v1, 0.0  ;;  %v68_v21 = vld [vmem:[%s119_s1] ss:$0 sm:$0xff] }
   0x3   :  { %20 = vadd.xlane.f32.xlu0 %v19_v2  ;;  %v69_v23 = vld [vmem:[%s120_s2] ss:$0 sm:$0xff] }
   0x7   :  { %23 = vadd.xlane.f32.xlu0 %v22_v3 }
  0x90   :  { %v21_v4 = vpop.xlane.xlu0 %20 }
  0x91   :  { %v26_v5 = vmul.f32 0.03125, %v21_v4 }
  0x93   :  { %v28_v6 = vsub.f32 %v14_v0, %v26_v5 }
  0x94   :  { %v24_v7 = vpop.xlane.xlu0 %23 }
  0x95   :  { %v27_v8 = vmul.f32 0.03125, %v24_v7  ;;  %v30_v9 = vmul.f32 %v28_v6, %v28_v6 }
  0x97   :  { %v29_v10 = vsub.f32 %v15_v1, %v27_v8  ;;  %v32_v11 = vsel %vm18_vm0, %v30_v9, 0.0 }
  0x98   :  { %33 = vadd.xlane.f32.xlu1 %v32_v11 }
  0x99   :  { %v31_v12 = vmul.f32 %v29_v10, %v29_v10 }
  0x9b   :  { %v35_v13 = vsel %vm18_vm0, %v31_v12, 0.0 }
  0x9c   :  { %36 = vadd.xlane.f32.xlu1 %v35_v13 }
 0x125   :  { %v34_v14 = vpop.xlane.xlu1 %33 }
 0x126   :  { %v38_v15 = vmul.f32 0.03125, %v34_v14 }
 0x128   :  { %v40_v16 = vadd.f32 1e-05, %v38_v15 }
 0x129   :  { %v37_v17 = vpop.xlane.xlu1 %36 }
 0x12a   :  { %70 = vrsqrt.f32 %v40_v16  ;;  %v39_v18 = vmul.f32 0.03125, %v37_v17 }
 0x12c   :  { %v41_v19 = vadd.f32 1e-05, %v39_v18 }
 0x12e   :  { %72 = vrsqrt.f32 %v41_v19 }
 0x134   :  { %v71_v20 = vpop.eup %70 }
 0x135   :  { %v44_v22 = vmul.f32 %v71_v20, %v28_v6 }
 0x137   :  { %v52_v24 = vmul.f32 %v68_v21, %v44_v22 }
 0x138   :  { %v73_v25 = vpop.eup %72 }
 0x139   :  { %v60_v26 = vadd.f32 %v69_v23, %v52_v24  ;;  %v45_v27 = vmul.f32 %v73_v25, %v29_v10 }
 0x13b   :  { %62 = vst.msk [vmem:[%s121_s3] sm:$0xff] %vm18_vm0, %v60_v26  ;;  %v53_v28 = vmul.f32 %v68_v21, %v45_v27 }
 0x13d   :  { %v61_v29 = vadd.f32 %v69_v23, %v53_v28 }
 0x13f   :  { %63 = vst.msk [vmem:[%s121_s3 + $0x8] sm:$0xff] %vm18_vm0, %v61_v29 }

// kernel: transformer_decoder.3
= control target key start
LH: loop header
LB: loop body
LE: loop exit
PB: predicated region body
PF: predicated region fallthrough
CT: control target
= control target key end

     0   :  { %v3246_v0 = vmov 0.0   ;;  %vm3247_vm0 = vmmov 0   ;;  %vm117_vm1 = vcmask 261120   ;;  %vm230_vm2 = vcmask 64512   ;;  %s3251_s23 = smov 120   ;;  %s3254_s24 = smov 72   ;;  %s3917_s4 = inlined_call_operand.vmem [shape: bf16[32,96], index: 4, kind: input, shape index: {}]   ;;  %s3918_s0 = inlined_call_operand.vmem [shape: f32[16,32], index: 0, kind: input, shape index: {}]   ;;  %s3919_s1 = inlined_call_operand.vmem [shape: f32[16,32], index: 1, kind: input, shape index: {}]   ;;  %s3920_s5 = inlined_call_operand.vmem [shape: f32[1,96], index: 5, kind: input, shape index: {}]   ;;  %s3921_s6 = inlined_call_operand.vmem [shape: bf16[32,32], index: 6, kind: input, shape index: {}]   ;;  %s3922_s7 = inlined_call_operand.vmem [shape: f32[1,32], index: 7, kind: input, shape index: {}]   ;;  %s3923_s8 = inlined_call_operand.vmem [shape: bf16[32,96], index: 8, kind: input, shape index: {}]   ;;  %s3924_s2 = inlined_call_operand.vmem [shape: bf16[16,32], index: 2, kind: input, shape index: {}]   ;;  %s3925_s9 = inlined_call_operand.vmem [shape: f32[1,96], index: 9, kind: input, shape index: {}]   ;;  %s3926_s16 = inlined_call_operand.vmem [shape: f32[1,32], index: 16, kind: input, shape index: {}]   ;;  %s3927_s17 = inlined_call_operand.vmem [shape: f32[1,32], index: 17, kind: input, shape index: {}]   ;;  %s3928_s3 = inlined_call_operand.vmem [shape: bf16[16,32], index: 3, kind: input, shape index: {}]   ;;  %s3929_s10 = inlined_call_operand.vmem [shape: bf16[32,32], index: 10, kind: input, shape index: {}]   ;;  %s3930_s11 = inlined_call_operand.vmem [shape: f32[1,32], index: 11, kind: input, shape index: {}]   ;;  %s3931_s12 = inlined_call_operand.vmem [shape: bf16[32,64], index: 12, kind: input, shape index: {}]   ;;  %s3932_s14 = inlined_call_operand.vmem [shape: bf16[64,32], index: 14, kind: input, shape index: {}]   ;;  %s3933_s18 = inlined_call_operand.vmem [shape: f32[1,32], index: 18, kind: input, shape index: {}]   ;;  %s3934_s19 = inlined_call_operand.vmem [shape: f32[1,32], index: 19, kind: input, shape index: {}]   ;;  %s3935_s13 = inlined_call_operand.vmem [shape: f32[1,64], index: 13, kind: input, shape index: {}]   ;;  %s3936_s15 = inlined_call_operand.vmem [shape: f32[1,32], index: 15, kind: input, shape index: {}]   ;;  %s3937_s20 = inlined_call_operand.vmem [shape: f32[1,32], index: 20, kind: input, shape index: {}]   ;;  %s3938_s21 = inlined_call_operand.vmem [shape: f32[1,32], index: 21, kind: input, shape index: {}]   ;;  %s3939_s22 = inlined_call_operand.vmem [shape: f32[16,32], index: 22, kind: output, shape index: {}]  }
   0x1   :  { %3945 = sst [smem:[#allocation2_spill]] %s3917_s4  ;;  %2843 = vmatprep.subr.bf16.mxu1 %v3246_v0  ;;  %2847 = vmatprep.mubr.msk.bf16.mxu1 %vm3247_vm0, %v3246_v0  ;;  %s3250_s4 = smov 88   ;;  %vm352_vm3 = vcmask 1043456   ;;  %vm1128_vm4 = vcmask 130048   ;;  %vm1131_vm5 = vcmask 195584   ;;  %vm2566_vm6 = vcmask 523264  }
   0x2   :  { %3946 = sst [smem:[#allocation3_spill]] %s3918_s0  ;;  %s3952_s29 = sld [smem:[#allocation2_spill]]  ;;  %2859 = vmatprep.subr.bf16.mxu0 %v3246_v0  ;;  %2861 = vmatprep.mubr.msk.bf16.mxu0 %vm3247_vm0, %v3246_v0 }
   0x3   :  { %3947 = sst [smem:[#allocation4_spill]] %s3919_s1  ;;  %s3953_s0 = sld [smem:[#allocation3_spill]] }
   0x4   :  { %3948 = sst [smem:[#allocation5_spill]] %s3920_s5  ;;  %s3954_s26 = sld [smem:[#allocation4_spill]] }
   0x5   :  { %3949 = sst [smem:[#allocation6_spill]] %s3921_s6  ;;  %s3248_s1 = smov 64  }
   0x6   :  { %3950 = sst [smem:[#allocation7_spill]] %s3922_s7  ;;  %s3955_s30 = sld [smem:[#allocation5_spill]] }
   0x7   :  { %3951 = sst [smem:[#allocation8_spill]] %s3923_s8  ;;  %s3249_s6 = smov 96  }
   0x8   :  { %v3154_v1 = vld [vmem:[%s3952_s29] sm:$0xff]   ;;  %v3155_v2 = vld [vmem:[%s3952_s29 + $0x8] sm:$0xff]   ;;  %s3253_s7 = smov 112   ;;  %s3255_s8 = smov 104  }
   0x9   :  { %2844 = vmatpush3.bf16.msra.mxu1 %v3154_v1  ;;  %v3389_v3 = vld [vmem:[%s3953_s0] sm:$0xff]  ;;  %v3394_v4 = vld [vmem:[%s3953_s0 + $0x8] sm:$0xff]  ;;  %163 = vrot.lane.b32.xlu0 %v3154_v1, %s3248_s1  ;;  %s3252_s0 = smov 80   ;;  %s3256_s25 = smov 8  }
   0xa   :  { %v3399_v5 = vld [vmem:[%s3954_s26] sm:$0xff]  ;;  %2845 = vmatprep.subr.bf16.mxu1 %v3246_v0  ;;  %v3406_v6 = vld [vmem:[%s3954_s26 + $0x8] sm:$0xff]  ;;  %v162_v12 = vpack.c.bf16 %v3394_v4, %v3389_v3  ;;  %s3257_s26 = smov 16   ;;  %s3956_s28 = sld [smem:[#allocation6_spill]] }
   0xb   :  { %v86_v7 = vadd.f32 %v3399_v5, %v3389_v3  ;;  %v87_v8 = vadd.f32 %v3406_v6, %v3394_v4  ;;  %s3957_s27 = sld [smem:[#allocation7_spill]]  ;;  %s3958_s29 = sld [smem:[#allocation8_spill]] }
   0xc   :  { %v2661_v13 = vld [vmem:[%s3955_s30] ss:$0 sm:$0xff] }
   0xd   :  { %2846 = vmatpush3.bf16.msra.mxu1 %v3155_v2  ;;  %v98_v9 = vpack.c.bf16 %v87_v8, %v86_v7  ;;  %165 = vrot.lane.b32.xlu0 %v3155_v2, %s3248_s1 }
   0xe   :  { %2851 = vmatprep.subr.bf16.mxu1 %v3246_v0 }
  0x10   :  { %2848 = vmatmul.mubr.msk.bf16.vlgmr.msra.gmra.mrb[0].mxu1 %vm117_vm1, %v98_v9 }
  0x11   :  { %2855 = vmatprep.mubr.msk.bf16.mxu1 %vm3247_vm0, %v3246_v0 }
  0x7b   :  { %v164_v10 = vpop.permute.xlu0 %163 }
  0x7c   :  { %2852 = vmatpush3.bf16.msra.mxu1 %v164_v10 }
  0x7d   :  { %2853 = vmatprep.subr.bf16.mxu1 %v3246_v0 }
  0x7f   :  { %v166_v11 = vpop.permute.xlu0 %165 }
  0x80   :  { %2854 = vmatpush3.bf16.msra.mxu1 %v166_v11 }
  0x81   :  { %2865 = vmatprep.subr.bf16.mxu1 %v3246_v0 }
  0x83   :  { %2856 = vmatmul.mubr.msk.bf16.vlgmr.msra.gmra.mrb[4].mxu1 %vm117_vm1, %v162_v12 }
  0x84   :  { %2867 = vmatprep.mubr.msk.bf16.mxu1 %vm3247_vm0, %v3246_v0 }
  0xe3   :  { %v155_v14 = vpop.f32.mrb[0].mxu1 }
  0xe4   :  { %v156_v15 = vadd.f32 %v2661_v13, %v155_v14  ;;  %v2849_v16 = vpop.f32.mrb[1].mxu1 }
  0xe5   :  { %v158_v17 = vpop.f32.mrb[2].mxu1 }
  0xe6   :  { %v3427_v18 = vpack.c.bf16 %v156_v15, %v156_v15  ;;  %v159_v19 = vadd.f32 %v2661_v13, %v158_v17  ;;  %v2850_v20 = vpop.f32.mrb[3].mxu1 }
  0xe8   :  { %228 = vrot.lane.b32.xlu1 %v3427_v18, %s3249_s6  ;;  %v3431_v21 = vpack.c.bf16 %v159_v19, %v159_v19 }
  0xec   :  { %277 = vrot.lane.b32.xlu1 %v3431_v21, %s3249_s6 }
 0x156   :  { %v209_v26 = vpop.f32.mrb[4].mxu1 }
 0x157   :  { %v2857_v27 = vpop.f32.mrb[5].mxu1 }
 0x158   :  { %v212_v28 = vpop.f32.mrb[6].mxu1 }
 0x159   :  { %v2858_v29 = vpop.f32.mrb[7].mxu1 }
 0x15a   :  { %v229_v22 = vpop.permute.xlu1 %228 }
 0x15b   :  { %v235_v23 = vsel %vm230_vm2, %v229_v22, 0 }
 0x15c   :  { %2860 = vmatpush3.bf16.xpose.msra.mxu0 %v235_v23 }
 0x15d   :  { %2871 = vmatprep.subr.bf16.mxu0 %v3246_v0 }
 0x15e   :  { %v278_v24 = vpop.permute.xlu1 %277 }
 0x15f   :  { %v283_v25 = vsel %vm230_vm2, %v278_v24, 0 }
 0x160   :  { %2866 = vmatpush3.bf16.xpose.msra.mxu1 %v283_v25 }
 0x161   :  { %2877 = vmatprep.subr.bf16.mxu1 %v3246_v0 }
 0x163   :  { %2862 = vmatmul.mubr.msk.bf16.vlgmr.msra.gmra.mrb[0].mxu0 %vm230_vm2, %v3427_v18 }
 0x164   :  { %2873 = vmatprep.mubr.msk.bf16.mxu0 %vm3247_vm0, %v3246_v0 }
 0x167   :  { %2868 = vmatmul.mubr.msk.bf16.vlgmr.msra.gmra.mrb[8].mxu1 %vm230_vm2, %v3431_v21 }
 0x168   :  { %2879 = vmatprep.mubr.msk.bf16.mxu1 %vm3247_vm0, %v3246_v0 }
 0x236   :  { %v271_v30 = vpop.f32.mrb[0].mxu0 }
 0x237   :  { %v2863_v31 = vpop.f32.mrb[1].mxu0  ;;  %v325_v32 = vsel %vm230_vm2, %v271_v30, -inf }
 0x238   :  { %326 = vmax.xlane.f32.xlu0 %v325_v32  ;;  %v274_v33 = vpop.f32.mrb[2].mxu0 }
 0x239   :  { %v2864_v34 = vpop.f32.mrb[3].mxu0 }
 0x23a   :  { %v319_v35 = vpop.f32.mrb[8].mxu1 }
 0x23b   :  { %v2869_v36 = vpop.f32.mrb[9].mxu1  ;;  %v328_v37 = vsel %vm230_vm2, %v319_v35, -inf }
 0x23c   :  { %329 = vmax.xlane.f32.xlu1 %v328_v37  ;;  %v322_v38 = vpop.f32.mrb[10].mxu1 }
 0x23d   :  { %v2870_v39 = vpop.f32.mrb[11].mxu1 }
 0x24d   :  { %169 = vrot.lane.b32.xlu1 %v2661_v13, %s3248_s1 }
 0x251   :  { %494 = vrot.lane.b32.xlu1 %v3431_v21, %s3250_s4 }
 0x255   :  { %442 = vrot.lane.b32.xlu1 %v3427_v18, %s3251_s23 }
 0x2c5   :  { %v327_v40 = vpop.xlane.xlu0 %326 }
 0x2c6   :  { %v331_v41 = vsub.f32 %v271_v30, %v327_v40 }
 0x2c8   :  { %v333_v42 = vmul.f32 1.442695, %v331_v41 }
 0x2c9   :  { %v330_v43 = vpop.xlane.xlu1 %329 }
 0x2ca   :  { %3170 = vpow2.f32 %v333_v42  ;;  %v332_v44 = vsub.f32 %v319_v35, %v330_v43 }
 0x2cc   :  { %v335_v45 = vmul.f32 1.442695, %v332_v44 }
 0x2cd   :  { %v170_v46 = vpop.permute.xlu1 %169 }
 0x2ce   :  { %3172 = vpow2.f32 %v335_v45  ;;  %v210_v47 = vadd.f32 %v209_v26, %v170_v46  ;;  %v213_v48 = vadd.f32 %v212_v28, %v170_v46 }
 0x2d0   :  { %v3453_v49 = vpack.c.bf16 %v210_v47, %v210_v47  ;;  %v3455_v50 = vpack.c.bf16 %v213_v48, %v213_v48 }
 0x2d1   :  { %v495_v7 = vpop.permute.xlu1 %494 }
 0x2d2   :  { %v354_v51 = vsel %vm352_vm3, %v3453_v49, 0  ;;  %v400_v52 = vsel %vm352_vm3, %v3455_v50, 0  ;;  %v500_v9 = vsel %vm230_vm2, %v495_v7, 0 }
 0x2d3   :  { %2872 = vmatpush3.bf16.msra.mxu0 %v354_v51  ;;  %2878 = vmatpush3.bf16.msra.mxu1 %v400_v52 }
 0x2d4   :  { %v3171_v53 = vpop.eup %3170  ;;  %2883 = vmatprep.subr.bf16.mxu0 %v3246_v0  ;;  %2889 = vmatprep.subr.bf16.mxu1 %v3246_v0 }
 0x2d5   :  { %v337_v54 = vsel %vm230_vm2, %v3171_v53, 0.0  ;;  %v443_v10 = vpop.permute.xlu1 %442 }
 0x2d6   :  { %338 = vadd.xlane.f32.xlu0 %v337_v54 }
 0x2d8   :  { %v3173_v55 = vpop.eup %3172 }
 0x2d9   :  { %v340_v56 = vsel %vm230_vm2, %v3173_v55, 0.0 }
 0x2da   :  { %341 = vadd.xlane.f32.xlu0 %v340_v56 }
 0x2f0   :  { %444 = vrot.lane.b32.xlu0 %v3427_v18, %s3250_s4  ;;  %s3258_s4 = smov 24  }
 0x2f4   :  { %492 = vrot.lane.b32.xlu0 %v3431_v21, %s3251_s23 }
 0x363   :  { %v339_v57 = vpop.xlane.xlu0 %338 }
 0x364   :  { %3174 = vrcp.f32 %v339_v57 }
 0x367   :  { %v342_v58 = vpop.xlane.xlu0 %341 }
 0x368   :  { %3176 = vrcp.f32 %v342_v58 }
 0x36b   :  { %v445_v61 = vpop.permute.xlu0 %444 }
 0x36c   :  { %v450_v2 = vsel %vm230_vm2, %v445_v61, 0 }
 0x36e   :  { %v3175_v59 = vpop.eup %3174 }
 0x36f   :  { %v344_v60 = vmul.f32 %v3175_v59, %v3171_v53  ;;  %v493_v11 = vpop.permute.xlu0 %492 }
 0x371   :  { %v347_v62 = vpack.c.bf16 %v344_v60, %v344_v60 }
 0x372   :  { %v3177_v63 = vpop.eup %3176 }
 0x373   :  { %v346_v1 = vmul.f32 %v3177_v63, %v3173_v55  ;;  %2874 = vmatmul.mubr.msk.bf16.vlgmr.msra.gmra.mrb[4].mxu0 %vm230_vm2, %v347_v62 }
 0x374   :  { %2884 = vmatpush3.bf16.xpose.msra.mxu0 %v450_v2  ;;  %2885 = vmatprep.mubr.msk.bf16.mxu0 %vm3247_vm0, %v3246_v0 }
 0x375   :  { %v348_v8 = vpack.c.bf16 %v346_v1, %v346_v1  ;;  %2895 = vmatprep.subr.bf16.mxu0 %v3246_v0 }
 0x377   :  { %2880 = vmatmul.mubr.msk.bf16.vlgmr.msra.gmra.mrb[12].mxu1 %vm230_vm2, %v348_v8 }
 0x378   :  { %2890 = vmatpush3.bf16.xpose.msra.mxu1 %v500_v9  ;;  %2891 = vmatprep.mubr.msk.bf16.mxu1 %vm3247_vm0, %v3246_v0 }
 0x379   :  { %2901 = vmatprep.subr.bf16.mxu1 %v3246_v0 }
 0x37b   :  { %2886 = vmatmul.mubr.msk.bf16.vlgmr.msra.gmra.mrb[8].mxu0 %vm230_vm2, %v443_v10 }
 0x37c   :  { %2897 = vmatprep.mubr.msk.bf16.mxu0 %vm3247_vm0, %v3246_v0 }
 0x37f   :  { %2892 = vmatmul.mubr.msk.bf16.vlgmr.msra.gmra.mrb[16].mxu1 %vm230_vm2, %v493_v11 }
 0x380   :  { %2903 = vmatprep.mubr.msk.bf16.mxu1 %vm3247_vm0, %v3246_v0 }
 0x446   :  { %v3484_v12 = vpop.f32.mrb[4].mxu0 }
 0x447   :  { %v2875_v13 = vpop.f32.mrb[5].mxu0 }
 0x448   :  { %v393_v14 = vpop.f32.mrb[6].mxu0 }
 0x449   :  { %v2876_v15 = vpop.f32.mrb[7].mxu0 }
 0x44a   :  { %v3486_v16 = vpop.f32.mrb[12].mxu1 }
 0x44b   :  { %v2881_v17 = vpop.f32.mrb[13].mxu1 }
 0x44c   :  { %v439_v19 = vpop.f32.mrb[14].mxu1 }
 0x44d   :  { %v2882_v20 = vpop.f32.mrb[15].mxu1 }
 0x44e   :  { %v486_v22 = vpop.f32.mrb[8].mxu0 }
 0x44f   :  { %v2887_v23 = vpop.f32.mrb[9].mxu0  ;;  %v542_v24 = vsel %vm230_vm2, %v486_v22, -inf }
 0x450   :  { %543 = vmax.xlane.f32.xlu1 %v542_v24  ;;  %v489_v25 = vpop.f32.mrb[10].mxu0 }
 0x451   :  { %v2888_v26 = vpop.f32.mrb[11].mxu0 }
 0x452   :  { %v536_v27 = vpop.f32.mrb[16].mxu1 }
 0x453   :  { %v2893_v28 = vpop.f32.mrb[17].mxu1  ;;  %v545_v29 = vsel %vm230_vm2, %v536_v27, -inf }
 0x454   :  { %546 = vmax.xlane.f32.xlu0 %v545_v29  ;;  %v539_v30 = vpop.f32.mrb[18].mxu1 }
 0x455   :  { %v2894_v31 = vpop.f32.mrb[19].mxu1 }
 0x461   :  { %614 = vrot.lane.b32.xlu1 %v3455_v50, %s3251_s23 }
 0x46a   :  { %566 = vrot.lane.b32.xlu0 %v3453_v49, %s3251_s23 }
 0x4dd   :  { %v544_v32 = vpop.xlane.xlu1 %543 }
 0x4de   :  { %v548_v33 = vsub.f32 %v486_v22, %v544_v32 }
 0x4e0   :  { %v550_v34 = vmul.f32 1.442695, %v548_v33 }
 0x4e1   :  { %v615_v35 = vpop.permute.xlu1 %614  ;;  %v547_v36 = vpop.xlane.xlu0 %546 }
 0x4e2   :  { %3178 = vpow2.f32 %v550_v34  ;;  %v620_v37 = vsel %vm352_vm3, %v615_v35, 0  ;;  %v549_v38 = vsub.f32 %v536_v27, %v547_v36 }
 0x4e3   :  { %2902 = vmatpush3.bf16.msra.mxu1 %v620_v37 }
 0x4e4   :  { %v552_v39 = vmul.f32 1.442695, %v549_v38  ;;  %2913 = vmatprep.subr.bf16.mxu1 %v3246_v0 }
 0x4e5   :  { %v567_v40 = vpop.permute.xlu0 %566 }
 0x4e6   :  { %3180 = vpow2.f32 %v552_v39  ;;  %v572_v41 = vsel %vm352_vm3, %v567_v40, 0 }
 0x4e7   :  { %2896 = vmatpush3.bf16.msra.mxu0 %v572_v41 }
 0x4e8   :  { %2907 = vmatprep.subr.bf16.mxu0 %v3246_v0 }
 0x4ec   :  { %v3179_v42 = vpop.eup %3178 }
 0x4ed   :  { %v554_v43 = vsel %vm230_vm2, %v3179_v42, 0.0 }
 0x4ee   :  { %555 = vadd.xlane.f32.xlu0 %v554_v43 }
 0x4f0   :  { %v3181_v44 = vpop.eup %3180 }
 0x4f1   :  { %v557_v45 = vsel %vm230_vm2, %v3181_v44, 0.0 }
 0x4f2   :  { %558 = vadd.xlane.f32.xlu1 %v557_v45 }
 0x503   :  { %664 = vrot.lane.b32.xlu1 %v3427_v18, %s3252_s0 }
 0x504   :  { %714 = vrot.lane.b32.xlu0 %v3431_v21, %s3252_s0 }
 0x507   :  { %662 = vrot.lane.b32.xlu1 %v3427_v18, %s3253_s7 }
 0x508   :  { %712 = vrot.lane.b32.xlu0 %v3431_v21, %s3253_s7 }
 0x57b   :  { %v556_v46 = vpop.xlane.xlu0 %555 }
 0x57c   :  { %3182 = vrcp.f32 %v556_v46 }
 0x57f   :  { %v559_v47 = vpop.xlane.xlu1 %558  ;;  %v715_v57 = vpop.permute.xlu0 %714 }
 0x580   :  { %3184 = vrcp.f32 %v559_v47  ;;  %v720_v59 = vsel %vm230_vm2, %v715_v57, 0 }
 0x583   :  { %v665_v52 = vpop.permute.xlu1 %664  ;;  %v713_v61 = vpop.permute.xlu0 %712 }
 0x584   :  { %v670_v56 = vsel %vm230_vm2, %v665_v52, 0 }
 0x586   :  { %v3183_v48 = vpop.eup %3182 }
 0x587   :  { %v561_v51 = vmul.f32 %v3183_v48, %v3179_v42  ;;  %v663_v60 = vpop.permute.xlu1 %662 }
 0x589   :  { %v564_v53 = vpack.c.bf16 %v561_v51, %v561_v51 }
 0x58a   :  { %v3185_v54 = vpop.eup %3184 }
 0x58b   :  { %v563_v55 = vmul.f32 %v3185_v54, %v3181_v44  ;;  %2898 = vmatmul.mubr.msk.bf16.vlgmr.msra.gmra.mrb[12].mxu0 %vm230_vm2, %v564_v53 }
 0x58c   :  { %2908 = vmatpush3.bf16.xpose.msra.mxu0 %v670_v56  ;;  %2909 = vmatprep.mubr.msk.bf16.mxu0 %vm3247_vm0, %v3246_v0 }
 0x58d   :  { %v565_v58 = vpack.c.bf16 %v563_v55, %v563_v55  ;;  %2919 = vmatprep.subr.bf16.mxu0 %v3246_v0 }
 0x58f   :  { %2904 = vmatmul.mubr.msk.bf16.vlgmr.msra.gmra.mrb[20].mxu1 %vm230_vm2, %v565_v58 }
 0x590   :  { %2914 = vmatpush3.bf16.xpose.msra.mxu1 %v720_v59  ;;  %2915 = vmatprep.mubr.msk.bf16.mxu1 %vm3247_vm0, %v3246_v0 }
 0x591   :  { %2925 = vmatprep.subr.bf16.mxu1 %v3246_v0 }
 0x593   :  { %2910 = vmatmul.mubr.msk.bf16.vlgmr.msra.gmra.mrb[16].mxu0 %vm230_vm2, %v663_v60 }
 0x594   :  { %2921 = vmatprep.mubr.msk.bf16.mxu0 %vm3247_vm0, %v3246_v0 }
 0x597   :  { %2916 = vmatmul.mubr.msk.bf16.vlgmr.msra.gmra.mrb[24].mxu1 %vm230_vm2, %v713_v61 }
 0x598   :  { %2927 = vmatprep.mubr.msk.bf16.mxu1 %vm3247_vm0, %v3246_v0 }
 0x65e   :  { %v3522_v62 = vpop.f32.mrb[12].mxu0 }
 0x65f   :  { %v2899_v63 = vpop.f32.mrb[13].mxu0 }
 0x660   :  { %v611_v1 = vpop.f32.mrb[14].mxu0 }
 0x661   :  { %v2900_v2 = vpop.f32.mrb[15].mxu0 }
 0x662   :  { %v3524_v7 = vpop.f32.mrb[20].mxu1 }
 0x663   :  { %v3124_v8 = vpack.i.bf16 %v3524_v7, %v3522_v62  ;;  %v2905_v9 = vpop.f32.mrb[21].mxu1 }
 0x664   :  { %v659_v10 = vpop.f32.mrb[22].mxu1 }
 0x665   :  { %v2906_v11 = vpop.f32.mrb[23].mxu1 }
 0x666   :  { %v706_v13 = vpop.f32.mrb[16].mxu0 }
 0x667   :  { %v2911_v14 = vpop.f32.mrb[17].mxu0  ;;  %v762_v15 = vsel %vm230_vm2, %v706_v13, -inf }
 0x668   :  { %763 = vmax.xlane.f32.xlu1 %v762_v15  ;;  %v709_v17 = vpop.f32.mrb[18].mxu0 }
 0x669   :  { %v2912_v19 = vpop.f32.mrb[19].mxu0 }
 0x66a   :  { %v756_v20 = vpop.f32.mrb[24].mxu1 }
 0x66b   :  { %v2917_v22 = vpop.f32.mrb[25].mxu1  ;;  %v765_v23 = vsel %vm230_vm2, %v756_v20, -inf }
 0x66c   :  { %766 = vmax.xlane.f32.xlu0 %v765_v23  ;;  %v759_v24 = vpop.f32.mrb[26].mxu1 }
 0x66d   :  { %v2918_v25 = vpop.f32.mrb[27].mxu1 }
 0x679   :  { %834 = vrot.lane.b32.xlu1 %v3455_v50, %s3253_s7 }
 0x682   :  { %786 = vrot.lane.b32.xlu0 %v3453_v49, %s3253_s7 }
 0x6f5   :  { %v764_v26 = vpop.xlane.xlu1 %763 }
 0x6f6   :  { %v768_v27 = vsub.f32 %v706_v13, %v764_v26 }
 0x6f8   :  { %v770_v28 = vmul.f32 1.442695, %v768_v27 }
 0x6f9   :  { %v835_v29 = vpop.permute.xlu1 %834  ;;  %v767_v30 = vpop.xlane.xlu0 %766 }
 0x6fa   :  { %3186 = vpow2.f32 %v770_v28  ;;  %v840_v31 = vsel %vm352_vm3, %v835_v29, 0  ;;  %v769_v32 = vsub.f32 %v756_v20, %v767_v30 }
 0x6fb   :  { %2926 = vmatpush3.bf16.msra.mxu1 %v840_v31 }
 0x6fc   :  { %v772_v33 = vmul.f32 1.442695, %v769_v32  ;;  %2937 = vmatprep.subr.bf16.mxu1 %v3246_v0 }
 0x6fd   :  { %v787_v34 = vpop.permute.xlu0 %786 }
 0x6fe   :  { %3188 = vpow2.f32 %v772_v33  ;;  %v792_v35 = vsel %vm352_vm3, %v787_v34, 0 }
 0x6ff   :  { %2920 = vmatpush3.bf16.msra.mxu0 %v792_v35 }
 0x700   :  { %2931 = vmatprep.subr.bf16.mxu0 %v3246_v0 }
 0x704   :  { %v3187_v36 = vpop.eup %3186 }
 0x705   :  { %v774_v37 = vsel %vm230_vm2, %v3187_v36, 0.0 }
 0x706   :  { %775 = vadd.xlane.f32.xlu0 %v774_v37 }
 0x708   :  { %v3189_v38 = vpop.eup %3188 }
 0x709   :  { %v777_v39 = vsel %vm230_vm2, %v3189_v38, 0.0 }
 0x70a   :  { %778 = vadd.xlane.f32.xlu1 %v777_v39  ;;  %v3157_v39 = vld [vmem:[%s3956_s28 + $0x8] sm:$0xff]  }
 0x71b   :  { %884 = vrot.lane.b32.xlu1 %v3427_v18, %s3254_s24 }
 0x71c   :  { %934 = vrot.lane.b32.xlu0 %v3431_v21, %s3254_s24 }
 0x71f   :  { %882 = vrot.lane.b32.xlu1 %v3427_v18, %s3255_s8 }
 0x720   :  { %932 = vrot.lane.b32.xlu0 %v3431_v21, %s3255_s8 }
 0x793   :  { %v776_v40 = vpop.xlane.xlu0 %775 }
 0x794   :  { %3190 = vrcp.f32 %v776_v40 }
 0x797   :  { %v779_v41 = vpop.xlane.xlu1 %778  ;;  %v935_v51 = vpop.permute.xlu0 %934 }
 0x798   :  { %3192 = vrcp.f32 %v779_v41  ;;  %v940_v21 = vsel %vm230_vm2, %v935_v51, 0 }
 0x79b   :  { %v885_v44 = vpop.permute.xlu1 %884  ;;  %v933_v53 = vpop.permute.xlu0 %932 }
 0x79c   :  { %v890_v48 = vsel %vm230_vm2, %v885_v44, 0 }
 0x79e   :  { %v3191_v42 = vpop.eup %3190 }
 0x79f   :  { %v781_v43 = vmul.f32 %v3191_v42, %v3187_v36  ;;  %v883_v52 = vpop.permute.xlu1 %882 }
 0x7a1   :  { %v784_v45 = vpack.c.bf16 %v781_v43, %v781_v43 }
 0x7a2   :  { %v3193_v46 = vpop.eup %3192 }
 0x7a3   :  { %v783_v47 = vmul.f32 %v3193_v46, %v3189_v38  ;;  %2922 = vmatmul.mubr.msk.bf16.vlgmr.msra.gmra.mrb[20].mxu0 %vm230_vm2, %v784_v45  ;;  %v3156_v38 = vld [vmem:[%s3956_s28] sm:$0xff]  }
 0x7a4   :  { %2932 = vmatpush3.bf16.xpose.msra.mxu0 %v890_v48  ;;  %2933 = vmatprep.mubr.msk.bf16.mxu0 %vm3247_vm0, %v3246_v0 }
 0x7a5   :  { %v785_v18 = vpack.c.bf16 %v783_v47, %v783_v47  ;;  %2943 = vmatprep.subr.bf16.mxu0 %v3246_v0 }
 0x7a7   :  { %2928 = vmatmul.mubr.msk.bf16.vlgmr.msra.gmra.mrb[28].mxu1 %vm230_vm2, %v785_v18 }
 0x7a8   :  { %2938 = vmatpush3.bf16.xpose.msra.mxu1 %v940_v21  ;;  %2939 = vmatprep.mubr.msk.bf16.mxu1 %vm3247_vm0, %v3246_v0 }
 0x7a9   :  { %2949 = vmatprep.subr.bf16.mxu1 %v3246_v0 }
 0x7ab   :  { %2934 = vmatmul.mubr.msk.bf16.vlgmr.msra.gmra.mrb[24].mxu0 %vm230_vm2, %v883_v52 }
 0x7ac   :  { %2945 = vmatprep.mubr.msk.bf16.mxu0 %vm3247_vm0, %v3246_v0 }
 0x7af   :  { %2940 = vmatmul.mubr.msk.bf16.vlgmr.msra.gmra.mrb[32].mxu1 %vm230_vm2, %v933_v53 }
 0x7b0   :  { %2951 = vmatprep.mubr.msk.bf16.mxu1 %vm3247_vm0, %v3246_v0 }
 0x876   :  { %v828_v54 = vpop.f32.mrb[20].mxu0 }
 0x877   :  { %v2923_v55 = vpop.f32.mrb[21].mxu0 }
 0x878   :  { %v831_v56 = vpop.f32.mrb[22].mxu0 }
 0x879   :  { %v2924_v57 = vpop.f32.mrb[23].mxu0 }
 0x87a   :  { %v876_v58 = vpop.f32.mrb[28].mxu1 }
 0x87b   :  { %v3129_v59 = vpack.i.bf16 %v876_v58, %v828_v54  ;;  %v2929_v60 = vpop.f32.mrb[29].mxu1 }
 0x87c   :  { %v879_v61 = vpop.f32.mrb[30].mxu1 }
 0x87d   :  { %v2930_v63 = vpop.f32.mrb[31].mxu1 }
 0x87e   :  { %v926_v1 = vpop.f32.mrb[24].mxu0 }
 0x87f   :  { %v2935_v2 = vpop.f32.mrb[25].mxu0  ;;  %v982_v9 = vsel %vm230_vm2, %v926_v1, -inf }
 0x880   :  { %983 = vmax.xlane.f32.xlu1 %v982_v9  ;;  %v929_v10 = vpop.f32.mrb[26].mxu0 }
 0x881   :  { %v2936_v11 = vpop.f32.mrb[27].mxu0 }
 0x882   :  { %v976_v13 = vpop.f32.mrb[32].mxu1 }
 0x883   :  { %v2941_v14 = vpop.f32.mrb[33].mxu1  ;;  %v985_v15 = vsel %vm230_vm2, %v976_v13, -inf }
 0x884   :  { %986 = vmax.xlane.f32.xlu0 %v985_v15  ;;  %v979_v17 = vpop.f32.mrb[34].mxu1 }
 0x885   :  { %v2942_v19 = vpop.f32.mrb[35].mxu1 }
 0x90d   :  { %v984_v20 = vpop.xlane.xlu1 %983 }
 0x90e   :  { %v988_v22 = vsub.f32 %v926_v1, %v984_v20 }
 0x910   :  { %v990_v23 = vmul.f32 1.442695, %v988_v22  ;;  %v3158_v22 = vld [vmem:[%s3958_s29] sm:$0xff]  }
 0x911   :  { %v987_v24 = vpop.xlane.xlu0 %986 }
 0x912   :  { %3194 = vpow2.f32 %v990_v23  ;;  %v989_v25 = vsub.f32 %v976_v13, %v987_v24 }
 0x914   :  { %v992_v26 = vmul.f32 1.442695, %v989_v25 }
 0x916   :  { %3196 = vpow2.f32 %v992_v26 }
 0x91c   :  { %v3195_v27 = vpop.eup %3194 }
 0x91d   :  { %v994_v28 = vsel %vm230_vm2, %v3195_v27, 0.0 }
 0x91e   :  { %995 = vadd.xlane.f32.xlu0 %v994_v28 }
 0x920   :  { %v3197_v29 = vpop.eup %3196 }
 0x921   :  { %v997_v30 = vsel %vm230_vm2, %v3197_v29, 0.0 }
 0x922   :  { %998 = vadd.xlane.f32.xlu1 %v997_v30 }
 0x933   :  { %1054 = vrot.lane.b32.xlu1 %v3455_v50, %s3255_s8 }
 0x934   :  { %1006 = vrot.lane.b32.xlu0 %v3453_v49, %s3255_s8 }
 0x937   :  { %3125 = vrot.lane.b32.xlu1 %v3124_v8, %s3256_s25 }
 0x938   :  { %3130 = vrot.lane.b32.xlu0 %v3129_v59, %s3257_s26 }
 0x9ab   :  { %v996_v31 = vpop.xlane.xlu0 %995 }
 0x9ac   :  { %3198 = vrcp.f32 %v996_v31 }
 0x9af   :  { %v999_v32 = vpop.xlane.xlu1 %998  ;;  %v1007_v33 = vpop.permute.xlu0 %1006 }
 0x9b0   :  { %3200 = vrcp.f32 %v999_v32  ;;  %v1012_v34 = vsel %vm352_vm3, %v1007_v33, 0  ;;  %v3630_v33 = vld [vmem:[%s3925_s9] ss:$0 sm:$0xff] }
 0x9b1   :  { %2944 = vmatpush3.bf16.msra.mxu0 %v1012_v34 }
 0x9b2   :  { %2955 = vmatprep.subr.bf16.mxu0 %v3246_v0 }
 0x9b3   :  { %v1055_v49 = vpop.permute.xlu1 %1054  ;;  %v3131_v52 = vpop.permute.xlu0 %3130 }
 0x9b4   :  { %v1060_v50 = vsel %vm352_vm3, %v1055_v49, 0  ;;  %v3133_v55 = vunpack.i.h.bf16 %v3131_v52  ;;  %v3132_v56 = vunpack.i.l.bf16 %v3131_v52 }
 0x9b5   :  { %2950 = vmatpush3.bf16.msra.mxu1 %v1060_v50 }
 0x9b6   :  { %v3199_v35 = vpop.eup %3198  ;;  %2963 = vmatprep.subr.bf16.mxu1 %v3246_v0 }
 0x9b7   :  { %v1001_v62 = vmul.f32 %v3199_v35, %v3195_v27  ;;  %v3126_v51 = vpop.permute.xlu1 %3125 }
 0x9b8   :  { %v3128_v18 = vunpack.i.h.bf16 %v3126_v51  ;;  %v3127_v21 = vunpack.i.l.bf16 %v3126_v51 }
 0x9b9   :  { %v1004_v7 = vpack.c.bf16 %v1001_v62, %v1001_v62 }
 0x9ba   :  { %v3201_v8 = vpop.eup %3200  ;;  %v1127_v53 = vsel %vm230_vm2, %v3486_v16, %v3128_v18  ;;  %v1126_v54 = vsel %vm230_vm2, %v3484_v12, %v3127_v21  ;;  %v2686_v12 = vld [vmem:[%s3957_s27] ss:$0 sm:$0xff] }
 0x9bb   :  { %v1003_v36 = vmul.f32 %v3201_v8, %v3197_v29  ;;  %2946 = vmatmul.mubr.msk.bf16.vlgmr.msra.gmra.mrb[28].mxu0 %vm230_vm2, %v1004_v7  ;;  %v1129_v60 = vsel %vm1128_vm4, %v1126_v54, %v3132_v56  ;;  %v1130_v61 = vsel %vm1128_vm4, %v1127_v53, %v3133_v55 }
 0x9bc   :  { %2959 = vmatprep.mubr.msk.bf16.mxu0 %vm3247_vm0, %v3246_v0  ;;  %2956 = vmatpush3.bf16.msra.mxu0 %v3156_v38  ;;  %v2690_v38 = vld [vmem:[%s3926_s16] ss:$0 sm:$0xff] }
 0x9bd   :  { %v1005_v37 = vpack.c.bf16 %v1003_v36, %v1003_v36  ;;  %2957 = vmatprep.subr.bf16.mxu0 %v3246_v0  ;;  %v3160_v36 = vld [vmem:[%s3924_s2] sm:$0xff]  }
 0x9bf   :  { %2952 = vmatmul.mubr.msk.bf16.vlgmr.msra.gmra.mrb[36].mxu1 %vm230_vm2, %v1005_v37 }
 0x9c0   :  { %2967 = vmatprep.mubr.msk.bf16.mxu1 %vm3247_vm0, %v3246_v0  ;;  %2958 = vmatpush3.bf16.msra.mxu0 %v3157_v39 }
 0x9c1   :  { %2971 = vmatprep.subr.bf16.mxu0 %v3246_v0  ;;  %2964 = vmatpush3.bf16.msra.mxu1 %v3158_v22 }
 0x9c2   :  { %2965 = vmatprep.subr.bf16.mxu1 %v3246_v0 }
 0xa8e   :  { %v1048_v40 = vpop.f32.mrb[28].mxu0 }
 0xa8f   :  { %v2947_v41 = vpop.f32.mrb[29].mxu0 }
 0xa90   :  { %v1051_v42 = vpop.f32.mrb[30].mxu0 }
 0xa91   :  { %v2948_v43 = vpop.f32.mrb[31].mxu0  ;;  %v2691_v42 = vld [vmem:[%s3927_s17] ss:$0 sm:$0xff] }
 0xa92   :  { %v1096_v44 = vpop.f32.mrb[36].mxu1 }
 0xa93   :  { %v3134_v45 = vpack.i.bf16 %v1096_v44, %v1048_v40  ;;  %v2953_v46 = vpop.f32.mrb[37].mxu1 }
 0xa94   :  { %v1099_v47 = vpop.f32.mrb[38].mxu1 }
 0xa95   :  { %3135 = vrot.lane.b32.xlu1 %v3134_v45, %s3258_s4  ;;  %v2954_v48 = vpop.f32.mrb[39].mxu1 }
 0xb07   :  { %v3136_v57 = vpop.permute.xlu1 %3135 }
 0xb08   :  { %v3138_v58 = vunpack.i.h.bf16 %v3136_v57  ;;  %v3137_v59 = vunpack.i.l.bf16 %v3136_v57 }
 0xb0a   :  { %v1133_v63 = vsel %vm1131_vm5, %v1130_v61, %v3138_v58  ;;  %v1132_v1 = vsel %vm1131_vm5, %v1129_v60, %v3137_v59 }
 0xb0b   :  { %v1134_v2 = vpack.c.bf16 %v1133_v63, %v1132_v1 }
 0xb0d   :  { %2960 = vmatmul.mubr.msk.bf16.vlgmr.msra.gmra.mrb[32].mxu0 %vm117_vm1, %v1134_v2 }
 0xb0e   :  { %2975 = vmatprep.mubr.msk.bf16.mxu0 %vm3247_vm0, %v3246_v0 }
 0xbe0   :  { %v1190_v16 = vpop.f32.mrb[32].mxu0 }
 0xbe1   :  { %v1191_v9 = vadd.f32 %v2686_v12, %v1190_v16  ;;  %v2961_v10 = vpop.f32.mrb[33].mxu0 }
 0xbe2   :  { %v1193_v11 = vpop.f32.mrb[34].mxu0 }
 0xbe3   :  { %v1194_v13 = vadd.f32 %v2686_v12, %v1193_v11  ;;  %v2962_v14 = vpop.f32.mrb[35].mxu0  ;;  %v1197_v15 = vadd.f32 %v1191_v9, %v3389_v3  ;;  %v3159_v3 = vld [vmem:[%s3958_s29 + $0x8] sm:$0xff]  }
 0xbe4   :  { %2966 = vmatpush3.bf16.msra.mxu1 %v3159_v3 }
 0xbe5   :  { %v1199_v17 = vsel %vm117_vm1, %v1197_v15, 0.0  ;;  %v1198_v19 = vadd.f32 %v1194_v13, %v3394_v4  ;;  %2979 = vmatprep.subr.bf16.mxu1 %v3246_v0 }
 0xbe6   :  { %1200 = vadd.xlane.f32.xlu0 %v1199_v17 }
 0xbe7   :  { %v1202_v20 = vsel %vm117_vm1, %v1198_v19, 0.0 }
 0xbe8   :  { %1203 = vadd.xlane.f32.xlu1 %v1202_v20 }
 0xbf9   :  { %1322 = vrot.lane.b32.xlu1 %v3158_v22, %s3249_s6 }
 0xbfd   :  { %1380 = vrot.lane.b32.xlu1 %v3158_v22, %s3248_s1 }
 0xc01   :  { %1382 = vrot.lane.b32.xlu1 %v3159_v3, %s3248_s1 }
 0xc73   :  { %v1201_v4 = vpop.xlane.xlu0 %1200 }
 0xc74   :  { %v1206_v23 = vmul.f32 0.03125, %v1201_v4 }
 0xc75   :  { %v1204_v24 = vpop.xlane.xlu1 %1203 }
 0xc76   :  { %v1208_v25 = vsub.f32 %v1197_v15, %v1206_v23  ;;  %v1207_v26 = vmul.f32 0.03125, %v1204_v24 }
 0xc78   :  { %v1209_v27 = vsub.f32 %v1198_v19, %v1207_v26  ;;  %v1210_v28 = vmul.f32 %v1208_v25, %v1208_v25 }
 0xc79   :  { %v1323_v32 = vpop.permute.xlu1 %1322 }
 0xc7a   :  { %v1212_v29 = vsel %vm117_vm1, %v1210_v28, 0.0  ;;  %v1211_v30 = vmul.f32 %v1209_v27, %v1209_v27  ;;  %2972 = vmatpush3.bf16.msra.mxu0 %v1323_v32 }
 0xc7b   :  { %1213 = vadd.xlane.f32.xlu0 %v1212_v29  ;;  %2973 = vmatprep.subr.bf16.mxu0 %v3246_v0 }
 0xc7c   :  { %v1215_v31 = vsel %vm117_vm1, %v1211_v30, 0.0 }
 0xc7d   :  { %v1381_v51 = vpop.permute.xlu1 %1380 }
 0xc7f   :  { %1216 = vadd.xlane.f32.xlu0 %v1215_v31 }
 0xc81   :  { %v1383_v21 = vpop.permute.xlu1 %1382 }
 0xc95   :  { %1324 = vrot.lane.b32.xlu0 %v3159_v3, %s3249_s6 }
 0xc99   :  { %1328 = vrot.lane.b32.xlu0 %v3630_v33, %s3249_s6 }
 0xd08   :  { %v1214_v34 = vpop.xlane.xlu0 %1213 }
 0xd09   :  { %v1218_v49 = vmul.f32 0.03125, %v1214_v34 }
 0xd0b   :  { %v1220_v50 = vadd.f32 1e-05, %v1218_v49 }
 0xd0c   :  { %v1217_v35 = vpop.xlane.xlu0 %1216 }
 0xd0d   :  { %3202 = vrsqrt.f32 %v1220_v50  ;;  %v1219_v62 = vmul.f32 0.03125, %v1217_v35 }
 0xd0f   :  { %v1221_v7 = vadd.f32 1e-05, %v1219_v62 }
 0xd10   :  { %v1325_v8 = vpop.permute.xlu0 %1324 }
 0xd11   :  { %3204 = vrsqrt.f32 %v1221_v7  ;;  %2974 = vmatpush3.bf16.msra.mxu0 %v1325_v8 }
 0xd12   :  { %2987 = vmatprep.subr.bf16.mxu0 %v3246_v0 }
 0xd14   :  { %2976 = vmatmul.mubr.msk.bf16.vlgmr.msra.gmra.mrb[36].mxu0 %vm117_vm1, %v3160_v36 }
 0xd15   :  { %2989 = vmatprep.mubr.msk.bf16.mxu0 %vm3247_vm0, %v3246_v0 }
 0xd17   :  { %v3203_v37 = vpop.eup %3202 }
 0xd18   :  { %v1224_v39 = vmul.f32 %v3203_v37, %v1208_v25 }
 0xd1a   :  { %v1232_v40 = vmul.f32 %v2690_v38, %v1224_v39 }
 0xd1b   :  { %v3205_v41 = vpop.eup %3204 }
 0xd1c   :  { %v1225_v43 = vmul.f32 %v3205_v41, %v1209_v27  ;;  %v3647_v45 = vadd.f32 %v2691_v42, %v1232_v40 }
 0xd1e   :  { %v1233_v44 = vmul.f32 %v2690_v38, %v1225_v43  ;;  %v1242_v47 = vadd.f32 %v3647_v45, %v3399_v5  ;;  %v3161_v5 = vld [vmem:[%s3928_s3] sm:$0xff]  }
 0xd20   :  { %v3649_v46 = vadd.f32 %v2691_v42, %v1233_v44 }
 0xd22   :  { %v1243_v48 = vadd.f32 %v3649_v46, %v3406_v6  ;;  %v1329_v6 = vpop.permute.xlu0 %1328 }
 0xd24   :  { %v1254_v18 = vpack.c.bf16 %v1243_v48, %v1242_v47 }
 0xd26   :  { %2968 = vmatmul.mubr.msk.bf16.vlgmr.msra.gmra.mrb[40].mxu1 %vm117_vm1, %v1254_v18 }
 0xd27   :  { %2980 = vmatpush3.bf16.msra.mxu1 %v1381_v51  ;;  %2983 = vmatprep.mubr.msk.bf16.mxu1 %vm3247_vm0, %v3246_v0 }
 0xd28   :  { %2981 = vmatprep.subr.bf16.mxu1 %v3246_v0 }
 0xd2b   :  { %2982 = vmatpush3.bf16.msra.mxu1 %v1383_v21 }
 0xd2c   :  { %2993 = vmatprep.subr.bf16.mxu1 %v3246_v0 }
 0xd2e   :  { %2984 = vmatmul.mubr.msk.bf16.vlgmr.msra.gmra.mrb[44].mxu1 %vm117_vm1, %v3161_v5 }
 0xd2f   :  { %2995 = vmatprep.mubr.msk.bf16.mxu1 %vm3247_vm0, %v3246_v0 }
 0xde7   :  { %v1368_v52 = vpop.f32.mrb[36].mxu0 }
 0xde8   :  { %v2977_v53 = vpop.f32.mrb[37].mxu0  ;;  %v1369_v54 = vadd.f32 %v1368_v52, %v1329_v6 }
 0xde9   :  { %v1371_v55 = vpop.f32.mrb[38].mxu0 }
 0xdea   :  { %v1372_v56 = vadd.f32 %v1371_v55, %v1329_v6  ;;  %v3666_v57 = vpack.c.bf16 %v1369_v54, %v1369_v54  ;;  %v2978_v58 = vpop.f32.mrb[39].mxu0 }
 0xdec   :  { %v3668_v59 = vpack.c.bf16 %v1372_v56, %v1372_v56  ;;  %v1455_v60 = vsel %vm230_vm2, %v3666_v57, 0 }
 0xded   :  { %2988 = vmatpush3.bf16.xpose.msra.mxu0 %v1455_v60 }
 0xdee   :  { %v1501_v61 = vsel %vm230_vm2, %v3668_v59, 0  ;;  %2999 = vmatprep.subr.bf16.mxu0 %v3246_v0 }
 0xdef   :  { %2994 = vmatpush3.bf16.xpose.msra.mxu1 %v1501_v61 }
 0xdf0   :  { %3005 = vmatprep.subr.bf16.mxu1 %v3246_v0 }
 0xdf9   :  { %v1310_v63 = vpop.f32.mrb[40].mxu1 }
 0xdfa   :  { %v1311_v1 = vadd.f32 %v3630_v33, %v1310_v63  ;;  %v2969_v2 = vpop.f32.mrb[41].mxu1 }
 0xdfb   :  { %v1313_v12 = vpop.f32.mrb[42].mxu1 }
 0xdfc   :  { %v3677_v16 = vpack.c.bf16 %v1311_v1, %v1311_v1  ;;  %v1314_v9 = vadd.f32 %v3630_v33, %v1313_v12  ;;  %v2970_v10 = vpop.f32.mrb[43].mxu1 }
 0xdfe   :  { %v3680_v11 = vpack.c.bf16 %v1314_v9, %v1314_v9  ;;  %2990 = vmatmul.mubr.msk.bf16.vlgmr.msra.gmra.mrb[40].mxu0 %vm230_vm2, %v3677_v16 }
 0xdff   :  { %3001 = vmatprep.mubr.msk.bf16.mxu0 %vm3247_vm0, %v3246_v0 }
 0xe00   :  { %2996 = vmatmul.mubr.msk.bf16.vlgmr.msra.gmra.mrb[48].mxu1 %vm230_vm2, %v3680_v11 }
 0xe01   :  { %3007 = vmatprep.mubr.msk.bf16.mxu1 %vm3247_vm0, %v3246_v0  ;;  %v1426_v13 = vpop.f32.mrb[44].mxu1 }
 0xe02   :  { %v2985_v14 = vpop.f32.mrb[45].mxu1 }
 0xe03   :  { %v1429_v15 = vpop.f32.mrb[46].mxu1 }
 0xe04   :  { %v2986_v17 = vpop.f32.mrb[47].mxu1 }
 0xed1   :  { %v1491_v19 = vpop.f32.mrb[40].mxu0 }
 0xed2   :  { %v2991_v20 = vpop.f32.mrb[41].mxu0  ;;  %v1543_v22 = vsel %vm230_vm2, %v1491_v19, -inf }
 0xed3   :  { %1544 = vmax.xlane.f32.xlu1 %v1543_v22  ;;  %v1494_v3 = vpop.f32.mrb[42].mxu0  ;;  %v1537_v4 = vpop.f32.mrb[48].mxu1 }
 0xed4   :  { %v2992_v23 = vpop.f32.mrb[43].mxu0  ;;  %v2997_v24 = vpop.f32.mrb[49].mxu1  ;;  %v1546_v25 = vsel %vm230_vm2, %v1537_v4, -inf }
 0xed5   :  { %1547 = vmax.xlane.f32.xlu0 %v1546_v25  ;;  %v1540_v26 = vpop.f32.mrb[50].mxu1 }
 0xed6   :  { %v2998_v27 = vpop.f32.mrb[51].mxu1 }
 0xee4   :  { %1661 = vrot.lane.b32.xlu1 %v3666_v57, %s3251_s23 }
 0xf60   :  { %v1545_v28 = vpop.xlane.xlu1 %1544 }
 0xf61   :  { %v1549_v29 = vsub.f32 %v1491_v19, %v1545_v28 }
 0xf62   :  { %v1548_v30 = vpop.xlane.xlu0 %1547 }
 0xf63   :  { %v1551_v31 = vmul.f32 1.442695, %v1549_v29  ;;  %v1550_v32 = vsub.f32 %v1537_v4, %v1548_v30 }
 0xf64   :  { %v1662_v7 = vpop.permute.xlu1 %1661 }
 0xf65   :  { %3206 = vpow2.f32 %v1551_v31  ;;  %v1553_v34 = vmul.f32 1.442695, %v1550_v32  ;;  %v1667_v5 = vsel %vm230_vm2, %v1662_v7, 0 }
 0xf67   :  { %3208 = vpow2.f32 %v1553_v34 }
 0xf6f   :  { %v3207_v49 = vpop.eup %3206 }
 0xf70   :  { %v1555_v50 = vsel %vm230_vm2, %v3207_v49, 0.0 }
 0xf71   :  { %v3209_v35 = vpop.eup %3208  ;;  %1556 = vadd.xlane.f32.xlu0 %v1555_v50 }
 0xf72   :  { %v1558_v62 = vsel %vm230_vm2, %v3209_v35, 0.0 }
 0xf73   :  { %1559 = vadd.xlane.f32.xlu1 %v1558_v62 }
 0xf84   :  { %1711 = vrot.lane.b32.xlu1 %v3668_v59, %s3251_s23 }
 0xf87   :  { %1386 = vrot.lane.b32.xlu0 %v3630_v33, %s3248_s1 }
 0xf88   :  { %1709 = vrot.lane.b32.xlu1 %v3680_v11, %s3251_s23 }
 0xf8b   :  { %1659 = vrot.lane.b32.xlu0 %v3677_v16, %s3251_s23 }
 0xffe   :  { %v1557_v8 = vpop.xlane.xlu0 %1556 }
 0xfff   :  { %3210 = vrcp.f32 %v1557_v8 }
0x1000   :  { %v1560_v36 = vpop.xlane.xlu1 %1559 }
0x1001   :  { %3212 = vrcp.f32 %v1560_v36 }
0x1002   :  { %v1387_v37 = vpop.permute.xlu0 %1386 }
0x1003   :  { %v1427_v38 = vadd.f32 %v1426_v13, %v1387_v37  ;;  %v1430_v39 = vadd.f32 %v1429_v15, %v1387_v37 }
0x1004   :  { %v1712_v18 = vpop.permute.xlu1 %1711 }
0x1005   :  { %v3704_v40 = vpack.c.bf16 %v1427_v38, %v1427_v38  ;;  %v3706_v41 = vpack.c.bf16 %v1430_v39, %v1430_v39  ;;  %v1717_v6 = vsel %vm230_vm2, %v1712_v18, 0 }
0x1006   :  { %v1660_v52 = vpop.permute.xlu0 %1659 }
0x1007   :  { %v1571_v33 = vsel %vm352_vm3, %v3704_v40, 0  ;;  %v1617_v42 = vsel %vm352_vm3, %v3706_v41, 0 }
0x1008   :  { %3000 = vmatpush3.bf16.msra.mxu0 %v1571_v33  ;;  %3006 = vmatpush3.bf16.msra.mxu1 %v1617_v42  ;;  %v1710_v53 = vpop.permute.xlu1 %1709 }
0x1009   :  { %v3211_v43 = vpop.eup %3210  ;;  %3011 = vmatprep.subr.bf16.mxu0 %v3246_v0  ;;  %3017 = vmatprep.subr.bf16.mxu1 %v3246_v0 }
0x100a   :  { %v1562_v44 = vmul.f32 %v3211_v43, %v3207_v49 }
0x100b   :  { %v3213_v47 = vpop.eup %3212 }
0x100c   :  { %v1564_v48 = vmul.f32 %v3213_v47, %v3209_v35  ;;  %v1565_v51 = vpack.c.bf16 %v1562_v44, %v1562_v44 }
0x100e   :  { %3002 = vmatmul.mubr.msk.bf16.vlgmr.msra.gmra.mrb[44].mxu0 %vm230_vm2, %v1565_v51  ;;  %v1566_v21 = vpack.c.bf16 %v1564_v48, %v1564_v48 }
0x100f   :  { %3013 = vmatprep.mubr.msk.bf16.mxu0 %vm3247_vm0, %v3246_v0 }
0x1010   :  { %3008 = vmatmul.mubr.msk.bf16.vlgmr.msra.gmra.mrb[52].mxu1 %vm230_vm2, %v1566_v21 }
0x1011   :  { %3012 = vmatpush3.bf16.xpose.msra.mxu0 %v1667_v5  ;;  %3018 = vmatpush3.bf16.xpose.msra.mxu1 %v1717_v6 }
0x1012   :  { %3019 = vmatprep.mubr.msk.bf16.mxu1 %vm3247_vm0, %v3246_v0  ;;  %3023 = vmatprep.subr.bf16.mxu0 %v3246_v0 }
0x1013   :  { %3029 = vmatprep.subr.bf16.mxu1 %v3246_v0 }
0x1018   :  { %3014 = vmatmul.mubr.msk.bf16.vlgmr.msra.gmra.mrb[48].mxu0 %vm230_vm2, %v1660_v52  ;;  %3020 = vmatmul.mubr.msk.bf16.vlgmr.msra.gmra.mrb[56].mxu1 %vm230_vm2, %v1710_v53 }
0x1019   :  { %3025 = vmatprep.mubr.msk.bf16.mxu0 %vm3247_vm0, %v3246_v0  ;;  %3031 = vmatprep.mubr.msk.bf16.mxu1 %vm3247_vm0, %v3246_v0 }
0x10e1   :  { %v3730_v54 = vpop.f32.mrb[44].mxu0 }
0x10e2   :  { %v3003_v55 = vpop.f32.mrb[45].mxu0 }
0x10e3   :  { %v1610_v56 = vpop.f32.mrb[46].mxu0  ;;  %v3732_v58 = vpop.f32.mrb[52].mxu1 }
0x10e4   :  { %v3004_v60 = vpop.f32.mrb[47].mxu0  ;;  %v3009_v61 = vpop.f32.mrb[53].mxu1 }
0x10e5   :  { %v1656_v63 = vpop.f32.mrb[54].mxu1 }
0x10e6   :  { %v3010_v1 = vpop.f32.mrb[55].mxu1 }
0x10eb   :  { %v1703_v2 = vpop.f32.mrb[48].mxu0  ;;  %v1753_v12 = vpop.f32.mrb[56].mxu1 }
0x10ec   :  { %v3015_v9 = vpop.f32.mrb[49].mxu0  ;;  %v3021_v10 = vpop.f32.mrb[57].mxu1  ;;  %v1759_v13 = vsel %vm230_vm2, %v1703_v2, -inf  ;;  %v1762_v14 = vsel %vm230_vm2, %v1753_v12, -inf }
0x10ed   :  { %1760 = vmax.xlane.f32.xlu0 %v1759_v13  ;;  %v1706_v15 = vpop.f32.mrb[50].mxu0  ;;  %1763 = vmax.xlane.f32.xlu1 %v1762_v14  ;;  %v1756_v17 = vpop.f32.mrb[58].mxu1 }
0x10ee   :  { %v3016_v19 = vpop.f32.mrb[51].mxu0  ;;  %v3022_v20 = vpop.f32.mrb[59].mxu1 }
0x10fe   :  { %1783 = vrot.lane.b32.xlu1 %v3704_v40, %s3251_s23 }
0x1102   :  { %1881 = vrot.lane.b32.xlu1 %v3666_v57, %s3253_s7 }
0x1106   :  { %1931 = vrot.lane.b32.xlu1 %v3668_v59, %s3253_s7 }
0x110a   :  { %1929 = vrot.lane.b32.xlu1 %v3680_v11, %s3253_s7 }
0x117a   :  { %v1761_v22 = vpop.xlane.xlu0 %1760  ;;  %v1764_v3 = vpop.xlane.xlu1 %1763 }
0x117b   :  { %v1765_v4 = vsub.f32 %v1703_v2, %v1761_v22  ;;  %v1766_v23 = vsub.f32 %v1753_v12, %v1764_v3 }
0x117d   :  { %v1767_v24 = vmul.f32 1.442695, %v1765_v4  ;;  %v1769_v25 = vmul.f32 1.442695, %v1766_v23 }
0x117e   :  { %v1784_v26 = vpop.permute.xlu1 %1783 }
0x117f   :  { %3214 = vpow2.f32 %v1767_v24  ;;  %v1789_v27 = vsel %vm352_vm3, %v1784_v26, 0 }
0x1180   :  { %3024 = vmatpush3.bf16.msra.mxu0 %v1789_v27  ;;  %3216 = vpow2.f32 %v1769_v25 }
0x1181   :  { %3035 = vmatprep.subr.bf16.mxu0 %v3246_v0 }
0x1182   :  { %v1882_v62 = vpop.permute.xlu1 %1881 }
0x1183   :  { %v1887_v37 = vsel %vm230_vm2, %v1882_v62, 0 }
0x1186   :  { %v1932_v39 = vpop.permute.xlu1 %1931 }
0x1187   :  { %v1937_v42 = vsel %vm230_vm2, %v1932_v39, 0 }
0x1189   :  { %v3215_v28 = vpop.eup %3214 }
0x118a   :  { %v1771_v29 = vsel %vm230_vm2, %v3215_v28, 0.0  ;;  %v3217_v30 = vpop.eup %3216  ;;  %v1930_v44 = vpop.permute.xlu1 %1929 }
0x118b   :  { %1772 = vadd.xlane.f32.xlu0 %v1771_v29  ;;  %v1774_v31 = vsel %vm230_vm2, %v3217_v30, 0.0 }
0x118f   :  { %1775 = vadd.xlane.f32.xlu0 %v1774_v31 }
0x11a5   :  { %1831 = vrot.lane.b32.xlu0 %v3706_v41, %s3251_s23 }
0x11a9   :  { %1879 = vrot.lane.b32.xlu0 %v3677_v16, %s3253_s7 }
0x1218   :  { %v1773_v32 = vpop.xlane.xlu0 %1772 }
0x1219   :  { %3218 = vrcp.f32 %v1773_v32 }
0x121c   :  { %v1776_v34 = vpop.xlane.xlu0 %1775 }
0x121d   :  { %3220 = vrcp.f32 %v1776_v34 }
0x1220   :  { %v1832_v49 = vpop.permute.xlu0 %1831 }
0x1221   :  { %v1837_v50 = vsel %vm352_vm3, %v1832_v49, 0 }
0x1222   :  { %3030 = vmatpush3.bf16.msra.mxu1 %v1837_v50 }
0x1223   :  { %v3219_v35 = vpop.eup %3218  ;;  %3041 = vmatprep.subr.bf16.mxu1 %v3246_v0 }
0x1224   :  { %v1778_v7 = vmul.f32 %v3219_v35, %v3215_v28  ;;  %v1880_v43 = vpop.permute.xlu0 %1879 }
0x1226   :  { %v1781_v8 = vpack.c.bf16 %v1778_v7, %v1778_v7 }
0x1227   :  { %v3221_v36 = vpop.eup %3220 }
0x1228   :  { %v1780_v38 = vmul.f32 %v3221_v36, %v3217_v30  ;;  %3026 = vmatmul.mubr.msk.bf16.vlgmr.msra.gmra.mrb[52].mxu0 %vm230_vm2, %v1781_v8 }
0x1229   :  { %3036 = vmatpush3.bf16.xpose.msra.mxu0 %v1887_v37  ;;  %3037 = vmatprep.mubr.msk.bf16.mxu0 %vm3247_vm0, %v3246_v0 }
0x122a   :  { %v1782_v33 = vpack.c.bf16 %v1780_v38, %v1780_v38  ;;  %3047 = vmatprep.subr.bf16.mxu0 %v3246_v0 }
0x122c   :  { %3032 = vmatmul.mubr.msk.bf16.vlgmr.msra.gmra.mrb[60].mxu1 %vm230_vm2, %v1782_v33 }
0x122d   :  { %3042 = vmatpush3.bf16.xpose.msra.mxu1 %v1937_v42  ;;  %3043 = vmatprep.mubr.msk.bf16.mxu1 %vm3247_vm0, %v3246_v0 }
0x122e   :  { %3053 = vmatprep.subr.bf16.mxu1 %v3246_v0 }
0x1230   :  { %3038 = vmatmul.mubr.msk.bf16.vlgmr.msra.gmra.mrb[56].mxu0 %vm230_vm2, %v1880_v43 }
0x1231   :  { %3049 = vmatprep.mubr.msk.bf16.mxu0 %vm3247_vm0, %v3246_v0 }
0x1234   :  { %3044 = vmatmul.mubr.msk.bf16.vlgmr.msra.gmra.mrb[64].mxu1 %vm230_vm2, %v1930_v44 }
0x1235   :  { %3055 = vmatprep.mubr.msk.bf16.mxu1 %vm3247_vm0, %v3246_v0 }
0x12fb   :  { %v3770_v47 = vpop.f32.mrb[52].mxu0 }
0x12fc   :  { %v3027_v48 = vpop.f32.mrb[53].mxu0 }
0x12fd   :  { %v1828_v51 = vpop.f32.mrb[54].mxu0 }
0x12fe   :  { %v3028_v18 = vpop.f32.mrb[55].mxu0 }
0x12ff   :  { %v3772_v21 = vpop.f32.mrb[60].mxu1 }
0x1300   :  { %v3139_v5 = vpack.i.bf16 %v3772_v21, %v3770_v47  ;;  %v3033_v6 = vpop.f32.mrb[61].mxu1 }
0x1301   :  { %v1876_v52 = vpop.f32.mrb[62].mxu1 }
0x1302   :  { %v3034_v53 = vpop.f32.mrb[63].mxu1 }
0x1303   :  { %v1923_v55 = vpop.f32.mrb[56].mxu0 }
0x1304   :  { %v3039_v56 = vpop.f32.mrb[57].mxu0  ;;  %v1979_v60 = vsel %vm230_vm2, %v1923_v55, -inf }
0x1305   :  { %1980 = vmax.xlane.f32.xlu0 %v1979_v60  ;;  %v1926_v61 = vpop.f32.mrb[58].mxu0 }
0x1306   :  { %v3040_v63 = vpop.f32.mrb[59].mxu0 }
0x1307   :  { %v1973_v1 = vpop.f32.mrb[64].mxu1 }
0x1308   :  { %v3045_v2 = vpop.f32.mrb[65].mxu1  ;;  %v1982_v12 = vsel %vm230_vm2, %v1973_v1, -inf }
0x1309   :  { %1983 = vmax.xlane.f32.xlu1 %v1982_v12  ;;  %v1976_v9 = vpop.f32.mrb[66].mxu1 }
0x130a   :  { %v3046_v10 = vpop.f32.mrb[67].mxu1 }
0x131a   :  { %2003 = vrot.lane.b32.xlu1 %v3704_v40, %s3253_s7 }
0x131e   :  { %2101 = vrot.lane.b32.xlu1 %v3666_v57, %s3255_s8 }
0x1322   :  { %2151 = vrot.lane.b32.xlu1 %v3668_v59, %s3255_s8 }
0x1326   :  { %2149 = vrot.lane.b32.xlu1 %v3680_v11, %s3255_s8 }
0x1392   :  { %v1981_v13 = vpop.xlane.xlu0 %1980 }
0x1393   :  { %v1985_v14 = vsub.f32 %v1923_v55, %v1981_v13 }
0x1395   :  { %v1987_v15 = vmul.f32 1.442695, %v1985_v14 }
0x1396   :  { %v1984_v17 = vpop.xlane.xlu1 %1983 }
0x1397   :  { %3222 = vpow2.f32 %v1987_v15  ;;  %v1986_v19 = vsub.f32 %v1973_v1, %v1984_v17 }
0x1399   :  { %v1989_v20 = vmul.f32 1.442695, %v1986_v19 }
0x139a   :  { %v2004_v22 = vpop.permute.xlu1 %2003 }
0x139b   :  { %3224 = vpow2.f32 %v1989_v20  ;;  %v2009_v3 = vsel %vm352_vm3, %v2004_v22, 0 }
0x139c   :  { %3048 = vmatpush3.bf16.msra.mxu0 %v2009_v3 }
0x139d   :  { %3059 = vmatprep.subr.bf16.mxu0 %v3246_v0 }
0x139e   :  { %v2102_v28 = vpop.permute.xlu1 %2101 }
0x139f   :  { %v2107_v32 = vsel %vm230_vm2, %v2102_v28, 0 }
0x13a1   :  { %v3223_v57 = vpop.eup %3222 }
0x13a2   :  { %v1991_v59 = vsel %vm230_vm2, %v3223_v57, 0.0 }
0x13a3   :  { %1992 = vadd.xlane.f32.xlu0 %v1991_v59 }
0x13a5   :  { %v3225_v4 = vpop.eup %3224 }
0x13a6   :  { %v1994_v11 = vsel %vm230_vm2, %v3225_v4, 0.0 }
0x13a7   :  { %1995 = vadd.xlane.f32.xlu0 %v1994_v11  ;;  %v3163_v11 = vld [vmem:[%s3929_s10 + $0x8] sm:$0xff]  }
0x13bd   :  { %2051 = vrot.lane.b32.xlu0 %v3706_v41, %s3253_s7 }
0x13c1   :  { %2099 = vrot.lane.b32.xlu0 %v3677_v16, %s3255_s8  ;;  %v2152_v16 = vpop.permute.xlu1 %2151 }
0x13c2   :  { %v2157_v50 = vsel %vm230_vm2, %v2152_v16, 0 }
0x13c5   :  { %v2150_v62 = vpop.permute.xlu1 %2149 }
0x1430   :  { %v1993_v23 = vpop.xlane.xlu0 %1992 }
0x1431   :  { %3226 = vrcp.f32 %v1993_v23 }
0x1434   :  { %v1996_v24 = vpop.xlane.xlu0 %1995 }
0x1435   :  { %3228 = vrcp.f32 %v1996_v24 }
0x1438   :  { %v2052_v25 = vpop.permute.xlu0 %2051 }
0x1439   :  { %v2057_v26 = vsel %vm352_vm3, %v2052_v25, 0 }
0x143a   :  { %3054 = vmatpush3.bf16.msra.mxu1 %v2057_v26 }
0x143b   :  { %v3227_v27 = vpop.eup %3226  ;;  %3065 = vmatprep.subr.bf16.mxu1 %v3246_v0 }
0x143c   :  { %v1998_v29 = vmul.f32 %v3227_v27, %v3223_v57  ;;  %v2100_v35 = vpop.permute.xlu0 %2099 }
0x143e   :  { %v2001_v30 = vpack.c.bf16 %v1998_v29, %v1998_v29 }
0x143f   :  { %v3229_v31 = vpop.eup %3228 }
0x1440   :  { %v2000_v34 = vmul.f32 %v3229_v31, %v3225_v4  ;;  %3050 = vmatmul.mubr.msk.bf16.vlgmr.msra.gmra.mrb[60].mxu0 %vm230_vm2, %v2001_v30  ;;  %v3162_v4 = vld [vmem:[%s3929_s10] sm:$0xff]  }
0x1441   :  { %3060 = vmatpush3.bf16.xpose.msra.mxu0 %v2107_v32  ;;  %3061 = vmatprep.mubr.msk.bf16.mxu0 %vm3247_vm0, %v3246_v0 }
0x1442   :  { %v2002_v49 = vpack.c.bf16 %v2000_v34, %v2000_v34  ;;  %3071 = vmatprep.subr.bf16.mxu0 %v3246_v0 }
0x1444   :  { %3056 = vmatmul.mubr.msk.bf16.vlgmr.msra.gmra.mrb[68].mxu1 %vm230_vm2, %v2002_v49 }
0x1445   :  { %3066 = vmatpush3.bf16.xpose.msra.mxu1 %v2157_v50  ;;  %3067 = vmatprep.mubr.msk.bf16.mxu1 %vm3247_vm0, %v3246_v0 }
0x1446   :  { %3077 = vmatprep.subr.bf16.mxu1 %v3246_v0 }
0x1448   :  { %3062 = vmatmul.mubr.msk.bf16.vlgmr.msra.gmra.mrb[64].mxu0 %vm230_vm2, %v2100_v35 }
0x1449   :  { %3073 = vmatprep.mubr.msk.bf16.mxu0 %vm3247_vm0, %v3246_v0 }
0x144c   :  { %3068 = vmatmul.mubr.msk.bf16.vlgmr.msra.gmra.mrb[72].mxu1 %vm230_vm2, %v2150_v62 }
0x144d   :  { %3079 = vmatprep.mubr.msk.bf16.mxu1 %vm3247_vm0, %v3246_v0 }
0x1513   :  { %v2045_v7 = vpop.f32.mrb[60].mxu0 }
0x1514   :  { %v3051_v8 = vpop.f32.mrb[61].mxu0 }
0x1515   :  { %v2048_v36 = vpop.f32.mrb[62].mxu0 }
0x1516   :  { %v3052_v37 = vpop.f32.mrb[63].mxu0 }
0x1517   :  { %v2093_v38 = vpop.f32.mrb[68].mxu1 }
0x1518   :  { %v3144_v39 = vpack.i.bf16 %v2093_v38, %v2045_v7  ;;  %v3057_v33 = vpop.f32.mrb[69].mxu1 }
0x1519   :  { %v2096_v42 = vpop.f32.mrb[70].mxu1 }
0x151a   :  { %v3058_v43 = vpop.f32.mrb[71].mxu1 }
0x151b   :  { %v2143_v44 = vpop.f32.mrb[64].mxu0 }
0x151c   :  { %v3063_v48 = vpop.f32.mrb[65].mxu0  ;;  %v2199_v51 = vsel %vm230_vm2, %v2143_v44, -inf }
0x151d   :  { %2200 = vmax.xlane.f32.xlu0 %v2199_v51  ;;  %v2146_v18 = vpop.f32.mrb[66].mxu0 }
0x151e   :  { %v3064_v6 = vpop.f32.mrb[67].mxu0 }
0x151f   :  { %v2193_v52 = vpop.f32.mrb[72].mxu1 }
0x1520   :  { %v3069_v53 = vpop.f32.mrb[73].mxu1  ;;  %v2202_v55 = vsel %vm230_vm2, %v2193_v52, -inf }
0x1521   :  { %2203 = vmax.xlane.f32.xlu1 %v2202_v55  ;;  %v2196_v56 = vpop.f32.mrb[74].mxu1 }
0x1522   :  { %v3070_v60 = vpop.f32.mrb[75].mxu1 }
0x1532   :  { %2223 = vrot.lane.b32.xlu1 %v3704_v40, %s3255_s8 }
0x1536   :  { %3140 = vrot.lane.b32.xlu1 %v3139_v5, %s3256_s25 }
0x153a   :  { %3145 = vrot.lane.b32.xlu1 %v3144_v39, %s3257_s26 }
0x15aa   :  { %v2201_v61 = vpop.xlane.xlu0 %2200 }
0x15ab   :  { %v2205_v63 = vsub.f32 %v2143_v44, %v2201_v61 }
0x15ad   :  { %v2207_v1 = vmul.f32 1.442695, %v2205_v63 }
0x15ae   :  { %v2204_v2 = vpop.xlane.xlu1 %2203 }
0x15af   :  { %3230 = vpow2.f32 %v2207_v1  ;;  %v2206_v12 = vsub.f32 %v2193_v52, %v2204_v2 }
0x15b1   :  { %v2209_v9 = vmul.f32 1.442695, %v2206_v12 }
0x15b2   :  { %v2224_v10 = vpop.permute.xlu1 %2223 }
0x15b3   :  { %3232 = vpow2.f32 %v2209_v9  ;;  %v2229_v13 = vsel %vm352_vm3, %v2224_v10, 0 }
0x15b4   :  { %3072 = vmatpush3.bf16.msra.mxu0 %v2229_v13 }
0x15b5   :  { %3083 = vmatprep.subr.bf16.mxu0 %v3246_v0 }
0x15b6   :  { %v3141_v32 = vpop.permute.xlu1 %3140 }
0x15b7   :  { %v3143_v16 = vunpack.i.h.bf16 %v3141_v32  ;;  %v3142_v49 = vunpack.i.l.bf16 %v3141_v32 }
0x15b9   :  { %v3231_v40 = vpop.eup %3230  ;;  %v2344_v7 = vsel %vm230_vm2, %v3732_v58, %v3143_v16  ;;  %v2343_v8 = vsel %vm230_vm2, %v3730_v54, %v3142_v49  ;;  %v2722_v54 = vld [vmem:[%s3930_s11] ss:$0 sm:$0xff] }
0x15ba   :  { %v2211_v47 = vsel %vm230_vm2, %v3231_v40, 0.0  ;;  %v3146_v34 = vpop.permute.xlu1 %3145 }
0x15bb   :  { %2212 = vadd.xlane.f32.xlu0 %v2211_v47  ;;  %v3148_v50 = vunpack.i.h.bf16 %v3146_v34  ;;  %v3147_v35 = vunpack.i.l.bf16 %v3146_v34  ;;  %v3166_v47 = vld [vmem:[%s3932_s14] sm:$0xff]  }
0x15bd   :  { %v3233_v21 = vpop.eup %3232  ;;  %v2345_v38 = vsel %vm1128_vm4, %v2343_v8, %v3147_v35  ;;  %v2346_v39 = vsel %vm1128_vm4, %v2344_v7, %v3148_v50 }
0x15be   :  { %v2214_v5 = vsel %vm230_vm2, %v3233_v21, 0.0 }
0x15bf   :  { %2215 = vadd.xlane.f32.xlu0 %v2214_v5 }
0x15d5   :  { %2271 = vrot.lane.b32.xlu0 %v3706_v41, %s3255_s8 }
0x1648   :  { %v2213_v14 = vpop.xlane.xlu0 %2212 }
0x1649   :  { %3234 = vrcp.f32 %v2213_v14 }
0x164c   :  { %v2216_v15 = vpop.xlane.xlu0 %2215 }
0x164d   :  { %3236 = vrcp.f32 %v2216_v15 }
0x1650   :  { %v2272_v17 = vpop.permute.xlu0 %2271 }
0x1651   :  { %v2277_v19 = vsel %vm352_vm3, %v2272_v17, 0 }
0x1652   :  { %3078 = vmatpush3.bf16.msra.mxu1 %v2277_v19 }
0x1653   :  { %v3235_v20 = vpop.eup %3234  ;;  %3091 = vmatprep.subr.bf16.mxu1 %v3246_v0 }
0x1654   :  { %v2218_v22 = vmul.f32 %v3235_v20, %v3231_v40  ;;  %v3165_v40 = vld [vmem:[%s3931_s12 + $0x8] sm:$0xff]  }
0x1656   :  { %v2221_v3 = vpack.c.bf16 %v2218_v22, %v2218_v22 }
0x1657   :  { %v3237_v57 = vpop.eup %3236 }
0x1658   :  { %v2220_v59 = vmul.f32 %v3237_v57, %v3233_v21  ;;  %3074 = vmatmul.mubr.msk.bf16.vlgmr.msra.gmra.mrb[68].mxu0 %vm230_vm2, %v2221_v3  ;;  %v3167_v21 = vld [vmem:[%s3932_s14 + $0x8] sm:$0xff]   ;;  %v2726_v3 = vld [vmem:[%s3933_s18] ss:$0 sm:$0xff] }
0x1659   :  { %3087 = vmatprep.mubr.msk.bf16.mxu0 %vm3247_vm0, %v3246_v0  ;;  %3084 = vmatpush3.bf16.msra.mxu0 %v3162_v4 }
0x165a   :  { %v2222_v41 = vpack.c.bf16 %v2220_v59, %v2220_v59  ;;  %3085 = vmatprep.subr.bf16.mxu0 %v3246_v0 }
0x165c   :  { %3080 = vmatmul.mubr.msk.bf16.vlgmr.msra.gmra.mrb[76].mxu1 %vm230_vm2, %v2222_v41 }
0x165d   :  { %3095 = vmatprep.mubr.msk.bf16.mxu1 %vm3247_vm0, %v3246_v0  ;;  %3086 = vmatpush3.bf16.msra.mxu0 %v3163_v11  ;;  %v2727_v11 = vld [vmem:[%s3934_s19] ss:$0 sm:$0xff] }
0x165e   :  { %3099 = vmatprep.subr.bf16.mxu0 %v3246_v0 }
0x172b   :  { %v2265_v23 = vpop.f32.mrb[68].mxu0 }
0x172c   :  { %v3075_v24 = vpop.f32.mrb[69].mxu0 }
0x172d   :  { %v2268_v25 = vpop.f32.mrb[70].mxu0 }
0x172e   :  { %v3076_v26 = vpop.f32.mrb[71].mxu0 }
0x172f   :  { %v2313_v27 = vpop.f32.mrb[76].mxu1 }
0x1730   :  { %v3149_v28 = vpack.i.bf16 %v2313_v27, %v2265_v23  ;;  %v3081_v29 = vpop.f32.mrb[77].mxu1  ;;  %v3168_v27 = vld [vmem:[%s3932_s14 + $0x10] sm:$0xff]  }
0x1731   :  { %v2316_v30 = vpop.f32.mrb[78].mxu1  ;;  %v2728_v29 = vld [vmem:[%s3935_s13] ss:$0 sm:$0xff] }
0x1732   :  { %3150 = vrot.lane.b32.xlu0 %v3149_v28, %s3258_s4  ;;  %v3082_v31 = vpop.f32.mrb[79].mxu1  ;;  %v3169_v28 = vld [vmem:[%s3932_s14 + $0x18] sm:$0xff]  }
0x17a4   :  { %v3151_v62 = vpop.permute.xlu0 %3150 }
0x17a5   :  { %v3153_v36 = vunpack.i.h.bf16 %v3151_v62  ;;  %v3152_v37 = vunpack.i.l.bf16 %v3151_v62 }
0x17a7   :  { %v2348_v33 = vsel %vm1131_vm5, %v2346_v39, %v3153_v36  ;;  %v2347_v42 = vsel %vm1131_vm5, %v2345_v38, %v3152_v37 }
0x17a8   :  { %v2349_v43 = vpack.c.bf16 %v2348_v33, %v2347_v42 }
0x17aa   :  { %3088 = vmatmul.mubr.msk.bf16.vlgmr.msra.gmra.mrb[72].mxu0 %vm117_vm1, %v2349_v43 }
0x17ab   :  { %3107 = vmatprep.mubr.msk.bf16.mxu0 %vm3247_vm0, %v3246_v0  ;;  %3100 = vmatpush3.bf16.msra.mxu0 %v3166_v47 }
0x17ac   :  { %3101 = vmatprep.subr.bf16.mxu0 %v3246_v0 }
0x17af   :  { %3102 = vmatpush3.bf16.msra.mxu0 %v3167_v21 }
0x17b0   :  { %3103 = vmatprep.subr.bf16.mxu0 %v3246_v0 }
0x17b3   :  { %3104 = vmatpush3.bf16.msra.mxu0 %v3168_v27 }
0x17b4   :  { %3105 = vmatprep.subr.bf16.mxu0 %v3246_v0 }
0x17b7   :  { %3106 = vmatpush3.bf16.msra.mxu0 %v3169_v28 }
0x187d   :  { %v2405_v58 = vpop.f32.mrb[72].mxu0 }
0x187e   :  { %v2406_v44 = vadd.f32 %v2722_v54, %v2405_v58  ;;  %v3089_v48 = vpop.f32.mrb[73].mxu0 }
0x187f   :  { %v2408_v51 = vpop.f32.mrb[74].mxu0 }
0x1880   :  { %v2409_v18 = vadd.f32 %v2722_v54, %v2408_v51  ;;  %v3090_v6 = vpop.f32.mrb[75].mxu0  ;;  %v2412_v52 = vadd.f32 %v2406_v44, %v3647_v45 }
0x1882   :  { %v2414_v53 = vsel %vm117_vm1, %v2412_v52, 0.0  ;;  %v2413_v55 = vadd.f32 %v2409_v18, %v3649_v46  ;;  %v3164_v46 = vld [vmem:[%s3931_s12] sm:$0xff]  }
0x1883   :  { %2415 = vadd.xlane.f32.xlu1 %v2414_v53  ;;  %3092 = vmatpush3.bf16.msra.mxu1 %v3164_v46  ;;  %v2739_v46 = vld [vmem:[%s3938_s21] ss:$0 sm:$0xff] }
0x1884   :  { %v2417_v56 = vsel %vm117_vm1, %v2413_v55, 0.0  ;;  %3093 = vmatprep.subr.bf16.mxu1 %v3246_v0  ;;  %v2732_v0 = vld [vmem:[%s3936_s15] ss:$0 sm:$0xff] }
0x1885   :  { %2418 = vadd.xlane.f32.xlu0 %v2417_v56 }
0x1887   :  { %3094 = vmatpush3.bf16.msra.mxu1 %v3165_v40 }
0x1910   :  { %v2416_v60 = vpop.xlane.xlu1 %2415 }
0x1911   :  { %v2420_v61 = vmul.f32 0.03125, %v2416_v60 }
0x1912   :  { %v2419_v63 = vpop.xlane.xlu0 %2418 }
0x1913   :  { %v2422_v1 = vsub.f32 %v2412_v52, %v2420_v61  ;;  %v2421_v2 = vmul.f32 0.03125, %v2419_v63 }
0x1915   :  { %v2423_v12 = vsub.f32 %v2413_v55, %v2421_v2  ;;  %v2424_v9 = vmul.f32 %v2422_v1, %v2422_v1 }
0x1917   :  { %v2426_v10 = vsel %vm117_vm1, %v2424_v9, 0.0  ;;  %v2425_v13 = vmul.f32 %v2423_v12, %v2423_v12 }
0x1918   :  { %2427 = vadd.xlane.f32.xlu0 %v2426_v10  ;;  %v2738_v10 = vld [vmem:[%s3937_s20] ss:$0 sm:$0xff] }
0x1919   :  { %v2429_v45 = vsel %vm117_vm1, %v2425_v13, 0.0 }
0x191a   :  { %2430 = vadd.xlane.f32.xlu1 %v2429_v45 }
0x19a5   :  { %v2428_v5 = vpop.xlane.xlu0 %2427 }
0x19a6   :  { %v2432_v14 = vmul.f32 0.03125, %v2428_v5 }
0x19a7   :  { %v2431_v15 = vpop.xlane.xlu1 %2430 }
0x19a8   :  { %v2434_v17 = vadd.f32 1e-05, %v2432_v14  ;;  %v2433_v19 = vmul.f32 0.03125, %v2431_v15 }
0x19aa   :  { %3238 = vrsqrt.f32 %v2434_v17  ;;  %v2435_v20 = vadd.f32 1e-05, %v2433_v19 }
0x19ac   :  { %3240 = vrsqrt.f32 %v2435_v20 }
0x19b4   :  { %v3239_v22 = vpop.eup %3238 }
0x19b5   :  { %v2438_v57 = vmul.f32 %v3239_v22, %v2422_v1 }
0x19b6   :  { %v3241_v59 = vpop.eup %3240 }
0x19b7   :  { %v2446_v41 = vmul.f32 %v2726_v3, %v2438_v57  ;;  %v2439_v4 = vmul.f32 %v3241_v59, %v2423_v12 }
0x19b9   :  { %v2447_v23 = vmul.f32 %v2726_v3, %v2439_v4  ;;  %v2454_v24 = vadd.f32 %v2727_v11, %v2446_v41 }
0x19bb   :  { %v2455_v25 = vadd.f32 %v2727_v11, %v2447_v23 }
0x19bd   :  { %v2456_v26 = vpack.c.bf16 %v2455_v25, %v2454_v24 }
0x19bf   :  { %3096 = vmatmul.mubr.msk.bf16.vlgmr.msra.gmra.mrb[80].mxu1 %vm117_vm1, %v2456_v26 }
0x1a92   :  { %v2517_v30 = vpop.f32.mrb[80].mxu1 }
0x1a93   :  { %v2518_v31 = vadd.f32 %v2728_v29, %v2517_v30  ;;  %v3097_v32 = vpop.f32.mrb[81].mxu1 }
0x1a94   :  { %v2520_v34 = vpop.f32.mrb[82].mxu1 }
0x1a95   :  { %v2521_v16 = vadd.f32 %v2728_v29, %v2520_v34  ;;  %v3098_v49 = vpop.f32.mrb[83].mxu1  ;;  %v2524_v50 = vmax.f32 %v2518_v31, 0.0 }
0x1a97   :  { %v2525_v35 = vmax.f32 %v2521_v16, 0.0 }
0x1a99   :  { %v2526_v62 = vpack.c.bf16 %v2525_v35, %v2524_v50 }
0x1a9b   :  { %3108 = vmatmul.mubr.msk.bf16.vlgmr.msra.gmra.mrb[76].mxu0 %vm2566_vm6, %v2526_v62 }
0x1b6e   :  { %v2604_v7 = vpop.f32.mrb[76].mxu0 }
0x1b6f   :  { %v2605_v8 = vadd.f32 %v2732_v0, %v2604_v7  ;;  %v3109_v36 = vpop.f32.mrb[77].mxu0 }
0x1b70   :  { %v2607_v37 = vpop.f32.mrb[78].mxu0 }
0x1b71   :  { %v2608_v38 = vadd.f32 %v2732_v0, %v2607_v37  ;;  %v3110_v39 = vpop.f32.mrb[79].mxu0  ;;  %v2611_v33 = vadd.f32 %v2605_v8, %v2454_v24 }
0x1b73   :  { %v2613_v42 = vsel %vm117_vm1, %v2611_v33, 0.0  ;;  %v2612_v43 = vadd.f32 %v2608_v38, %v2455_v25 }
0x1b74   :  { %2614 = vadd.xlane.f32.xlu0 %v2613_v42 }
0x1b75   :  { %v2616_v54 = vsel %vm117_vm1, %v2612_v43, 0.0 }
0x1b76   :  { %2617 = vadd.xlane.f32.xlu1 %v2616_v54 }
0x1c01   :  { %v2615_v58 = vpop.xlane.xlu0 %2614 }
0x1c02   :  { %v2619_v44 = vmul.f32 0.03125, %v2615_v58 }
0x1c03   :  { %v2618_v48 = vpop.xlane.xlu1 %2617 }
0x1c04   :  { %v2621_v51 = vsub.f32 %v2611_v33, %v2619_v44  ;;  %v2620_v18 = vmul.f32 0.03125, %v2618_v48 }
0x1c06   :  { %v2622_v6 = vsub.f32 %v2612_v43, %v2620_v18  ;;  %v2623_v52 = vmul.f32 %v2621_v51, %v2621_v51 }
0x1c08   :  { %v2625_v53 = vsel %vm117_vm1, %v2623_v52, 0.0  ;;  %v2624_v55 = vmul.f32 %v2622_v6, %v2622_v6 }
0x1c09   :  { %2626 = vadd.xlane.f32.xlu0 %v2625_v53 }
0x1c0a   :  { %v2628_v56 = vsel %vm117_vm1, %v2624_v55, 0.0 }
0x1c0b   :  { %2629 = vadd.xlane.f32.xlu1 %v2628_v56 }
0x1c96   :  { %v2627_v60 = vpop.xlane.xlu0 %2626 }
0x1c97   :  { %v2631_v61 = vmul.f32 0.03125, %v2627_v60 }
0x1c98   :  { %v2630_v63 = vpop.xlane.xlu1 %2629 }
0x1c99   :  { %v2633_v1 = vadd.f32 1e-05, %v2631_v61  ;;  %v2632_v2 = vmul.f32 0.03125, %v2630_v63 }
0x1c9b   :  { %3242 = vrsqrt.f32 %v2633_v1  ;;  %v2634_v12 = vadd.f32 1e-05, %v2632_v2 }
0x1c9d   :  { %3244 = vrsqrt.f32 %v2634_v12 }
0x1ca5   :  { %v3243_v9 = vpop.eup %3242 }
0x1ca6   :  { %v2637_v13 = vmul.f32 %v3243_v9, %v2621_v51 }
0x1ca7   :  { %v3245_v45 = vpop.eup %3244 }
0x1ca8   :  { %v2645_v40 = vmul.f32 %v2738_v10, %v2637_v13  ;;  %v2638_v47 = vmul.f32 %v3245_v45, %v2622_v6 }
0x1caa   :  { %v2653_v21 = vadd.f32 %v2739_v46, %v2645_v40  ;;  %v2646_v5 = vmul.f32 %v2738_v10, %v2638_v47 }
0x1cac   :  { %2655 = vst.msk [vmem:[%s3939_s22] sm:$0xff] %vm117_vm1, %v2653_v21  ;;  %v2654_v14 = vadd.f32 %v2739_v46, %v2646_v5 }
0x1cae   :  { %2656 = vst.msk [vmem:[%s3939_s22 + $0x8] sm:$0xff] %vm117_vm1, %v2654_v14 }

</bundles_post_ra>
